<compile_context>
chip_gen: v6e
topology: v6e:2x2x1
jax: 0.10.0
libtpu: 0.0.40
codegen_flags: <defaults>
</compile_context>

<pallas_src>
import functools

import jax
import jax.numpy as jnp
import numpy as np
from jax.experimental import pallas as pl
from jax.experimental.pallas import tpu as pltpu

LANE = 128


def _round_up(x, m):
    return (x + m - 1) // m * m


def bottleneck_kernel(x_ref, w1_ref, b1_ref, w2_ref, b2_ref, w3_ref, b3_ref,
                      o_ref):
    # x_ref : (H+2, W, Cin_p)  -- whole zero-row-padded image of batch n (resident)
    # o_ref : (TH, W, Cout_p)  -- one row tile of the output
    th, w, cout_p = o_ref.shape
    hs = th + 2
    img_h = x_ref.shape[0] - 2
    cin_p = x_ref.shape[2]
    p_p = w1_ref.shape[1]
    h = pl.program_id(1)

    row0 = pl.multiple_of(h * th, th)
    xh = x_ref[pl.ds(row0, hs), :, :]                    # (TH+2, W, Cin_p) halo slab
    xm = xh.reshape(hs * w, cin_p)

    # ---- conv1 (1x1) + folded BN1 + ReLU (halo rows recomputed) ----
    t1 = jnp.dot(xm, w1_ref[...], preferred_element_type=jnp.float32)
    t1 = jnp.maximum(t1 + b1_ref[...], 0.0).reshape(hs, w, p_p)

    # conv2's zero padding applies to conv1's *output*, so slab rows that fall
    # outside the real image (they were computed from the wrapper's zero x-rows
    # and hold relu(b1)) must be zeroed.
    r = jax.lax.broadcasted_iota(jnp.int32, (hs, 1, 1), 0) + (h * th - 1)
    t1 = jnp.where(jnp.logical_and(r >= 0, r < img_h), t1, 0.0)

    # ---- conv2 (3x3, pad=1) + folded BN2 + ReLU as ONE im2col matmul ----
    # Column halo via a per-tile zero-column pad (alternative: pltpu.roll+mask);
    # row halo comes for free from the slab via leading-axis (untiled) slices.
    t1w = jnp.pad(t1, ((0, 0), (1, 1), (0, 0)))          # (TH+2, W+2, P_p)
    cols = (t1w[:, 0:w, :], t1, t1w[:, 2:w + 2, :])      # taps x-1, x, x+1
    taps = [cols[kx][ky:ky + th] for ky in range(3) for kx in range(3)]
    patches = jnp.concatenate(taps, axis=-1).reshape(th * w, 9 * p_p)
    t2 = jnp.dot(patches, w2_ref[...], preferred_element_type=jnp.float32)
    t2 = jnp.maximum(t2 + b2_ref[...], 0.0)

    # ---- conv3 (1x1) + folded BN3 + residual add + final ReLU ----
    t3 = jnp.dot(t2, w3_ref[...], preferred_element_type=jnp.float32)
    res = xh[1:th + 1].reshape(th * w, cout_p)           # Cin_p == Cout_p here
    out = jnp.maximum(t3 + b3_ref[...] + res, 0.0)
    o_ref[...] = out.reshape(th, w, cout_p)


@functools.partial(jax.jit, static_argnames=("tile_h",))
def bottleneck_pallas(x_nchw, kparams, tile_h=8):
    """x_nchw: (N, C, H, W) float32.  kparams: output of prepare_params."""
    w1, b1, w2m, b2, w3, b3 = kparams
    n, c, hh, ww = x_nchw.shape
    cin_p, p_p = w1.shape
    cout_p = w3.shape[1]
    assert cin_p == cout_p, "residual path assumes inplanes == planes*4"

    th = tile_h if hh % tile_h == 0 else hh

    # NCHW -> NHWC (channels on lanes), pad channels to a multiple of 128 and
    # add one zero halo row top/bottom so every row tile can read +-1 rows.
    # TODO(synk): callers that already hold NHWC activations could skip this.
    x = jnp.transpose(x_nchw, (0, 2, 3, 1))
    x = jnp.pad(x, ((0, 0), (1, 1), (0, 0), (0, cin_p - c)))

    grid = (n, hh // th)
    out = pl.pallas_call(
        bottleneck_kernel,
        out_shape=jax.ShapeDtypeStruct((n, hh, ww, cout_p), jnp.float32),
        grid=grid,
        in_specs=[
            # whole padded image of batch n; block index constant over the row
            # axis -> fetched once per n, kept resident, pipelined across n.
            pl.BlockSpec((None, hh + 2, ww, cin_p), lambda i, j: (i, 0, 0, 0)),
            pl.BlockSpec((cin_p, p_p), lambda i, j: (0, 0)),
            pl.BlockSpec((1, p_p), lambda i, j: (0, 0)),
            pl.BlockSpec((9 * p_p, p_p), lambda i, j: (0, 0)),
            pl.BlockSpec((1, p_p), lambda i, j: (0, 0)),
            pl.BlockSpec((p_p, cout_p), lambda i, j: (0, 0)),
            pl.BlockSpec((1, cout_p), lambda i, j: (0, 0)),
        ],
        out_specs=pl.BlockSpec((None, th, ww, cout_p),
                               lambda i, j: (i, j, 0, 0)),
        compiler_params=pltpu.CompilerParams(
            dimension_semantics=("parallel", "parallel"),
            # Tiles sized well under v7x's 64 MiB VMEM; 32 MiB scoped is ample.
            vmem_limit_bytes=32 * 1024 * 1024),
    )(x, w1, b1, w2m, b2, w3, b3)

    out = out[..., :c]                               # drop channel padding
    return jnp.transpose(out, (0, 3, 1, 2))          # back to NCHW


def prepare_params(params, inplanes, planes):
    """One-time host-side transform: fold eval-mode BN scale into the conv
    weights, zero-pad channels to multiples of 128 (lane/MXU dense), and
    reshape conv2 to its (9*P, P) im2col matrix."""
    w1, s1, b1, w2, s2, b2, w3, s3, b3 = params
    expansion = 4
    cin, p, cout = inplanes, planes, planes * expansion
    cin_p, p_p, cout_p = (_round_up(x, LANE) for x in (cin, p, cout))

    w1f = w1 * s1[None, :]
    w2f = w2 * s2[None, None, None, :]
    w3f = w3 * s3[None, :]

    w1p = jnp.zeros((cin_p, p_p), jnp.float32).at[:cin, :p].set(w1f)
    w2p = jnp.zeros((3, 3, p_p, p_p), jnp.float32).at[:, :, :p, :p].set(w2f)
    w3p = jnp.zeros((p_p, cout_p), jnp.float32).at[:p, :cout].set(w3f)

    b1p = jnp.zeros((1, p_p), jnp.float32).at[0, :p].set(b1)
    b2p = jnp.zeros((1, p_p), jnp.float32).at[0, :p].set(b2)
    b3p = jnp.zeros((1, cout_p), jnp.float32).at[0, :cout].set(b3)
    return (w1p, b1p, w2p.reshape(9 * p_p, p_p), b2p, w3p, b3p)


def make_params(key, inplanes, planes):
    """Deterministic conv weights + folded BN (eval-mode) scale/bias."""
    eps = 1e-5
    ks = jax.random.split(key, 12)
    expansion = 4

    def bn_fold(kg, kb, km, kv, c):
        gamma = 1.0 + 0.1 * jax.random.normal(kg, (c,), jnp.float32)
        beta = 0.1 * jax.random.normal(kb, (c,), jnp.float32)
        mean = 0.1 * jax.random.normal(km, (c,), jnp.float32)
        var = jnp.abs(1.0 + 0.1 * jax.random.normal(kv, (c,), jnp.float32))
        scale = gamma / jnp.sqrt(var + eps)
        bias = beta - mean * scale
        return scale, bias

    # conv weights stored as (Cin, Cout) matrices (NHWC matmul convention);
    # conv2 as (3, 3, Cin, Cout) == HWIO.
    w1 = 0.1 * jax.random.normal(ks[0], (inplanes, planes), jnp.float32)
    w2 = 0.1 * jax.random.normal(ks[1], (3, 3, planes, planes), jnp.float32)
    w3 = 0.1 * jax.random.normal(ks[2], (planes, planes * expansion), jnp.float32)
    s1, b1 = bn_fold(ks[3], ks[4], ks[5], ks[6], planes)
    s2, b2 = bn_fold(ks[7], ks[8], ks[9], ks[10], planes)
    s3, b3 = bn_fold(*jax.random.split(ks[11], 4), planes * expansion)
    return (w1, s1, b1, w2, s2, b2, w3, s3, b3)


def bottleneck_ref(x_nchw, params):
    """Plain-JAX reference (mirrors the PyTorch forward, eval-mode BN)."""
    (w1, s1, b1, w2, s2, b2, w3, s3, b3) = params
    x = jnp.transpose(x_nchw, (0, 2, 3, 1))  # NHWC

    def conv1x1(t, w):
        return jnp.einsum('nhwc,cd->nhwd', t, w)

    def conv3x3(t, w):
        return jax.lax.conv_general_dilated(
            t, w, window_strides=(1, 1), padding=((1, 1), (1, 1)),
            dimension_numbers=('NHWC', 'HWIO', 'NHWC'))

    out = jax.nn.relu(conv1x1(x, w1) * s1 + b1)
    out = jax.nn.relu(conv3x3(out, w2) * s2 + b2)
    out = conv1x1(out, w3) * s3 + b3
    out = jax.nn.relu(out + x)
    return jnp.transpose(out, (0, 3, 1, 2))


if __name__ == "__main__":
    key = jax.random.PRNGKey(0)
    k_x, k_p = jax.random.split(key)

    # Bottleneck(inplanes=16, planes=4) -> out channels = 4*4 = 16 = inplanes,
    # so the residual add is shape-consistent with downsample=None.
    n, cin, hh, ww = 2, 16, 16, 16
    planes = 4

    x = jax.random.normal(k_x, (n, cin, hh, ww), jnp.float32)
    params = make_params(k_p, cin, planes)
    kparams = prepare_params(params, cin, planes)   # one-time BN fold + pad

    y = bottleneck_pallas(x, kparams)
    jax.block_until_ready(y)

    y_ref = bottleneck_ref(x, params)
    assert y.shape == (n, cin, hh, ww)
    np.testing.assert_allclose(np.asarray(y), np.asarray(y_ref),
                               rtol=1e-4, atol=1e-4)
    print("KERNEL_OK")
</pallas_src>

<mosaic_0001>
module attributes {stable_mosaic.version = 11 : i64} {
  func.func @bottleneck_kernel(%arg0: i32, %arg1: i32, %arg2: memref<1x18x16x128xf32, #tpu.memory_space<vmem>>, %arg3: memref<128x128xf32, #tpu.memory_space<vmem>>, %arg4: memref<1x128xf32, #tpu.memory_space<vmem>>, %arg5: memref<1152x128xf32, #tpu.memory_space<vmem>>, %arg6: memref<1x128xf32, #tpu.memory_space<vmem>>, %arg7: memref<128x128xf32, #tpu.memory_space<vmem>>, %arg8: memref<1x128xf32, #tpu.memory_space<vmem>>, %arg9: memref<1x8x16x128xf32, #tpu.memory_space<vmem>>) attributes {dimension_semantics = [#tpu.dimension_semantics<parallel>, #tpu.dimension_semantics<parallel>], iteration_bounds = array<i64: 2, 2>, scalar_prefetch = 0 : i64, scratch_operands = 0 : i64, tpu.core_type = #tpu.core_type<tc>, window_params = [{transform_indices = @transform_0, window_bounds = array<i64: 1, 18, 16, 128>}, {pipeline_mode = #tpu.pipeline_mode<synchronous>, transform_indices = @transform_1, window_bounds = array<i64: 128, 128>}, {pipeline_mode = #tpu.pipeline_mode<synchronous>, transform_indices = @transform_2, window_bounds = array<i64: 1, 128>}, {pipeline_mode = #tpu.pipeline_mode<synchronous>, transform_indices = @transform_3, window_bounds = array<i64: 1152, 128>}, {pipeline_mode = #tpu.pipeline_mode<synchronous>, transform_indices = @transform_4, window_bounds = array<i64: 1, 128>}, {pipeline_mode = #tpu.pipeline_mode<synchronous>, transform_indices = @transform_5, window_bounds = array<i64: 128, 128>}, {pipeline_mode = #tpu.pipeline_mode<synchronous>, transform_indices = @transform_6, window_bounds = array<i64: 1, 128>}, {transform_indices = @transform_7, window_bounds = array<i64: 1, 8, 16, 128>}]} {
    %c8_i32 = arith.constant 8 : i32
    %0 = arith.muli %arg1, %c8_i32 : i32
    %1 = tpu.assume_multiple %0, 8 : i32
    %c0 = arith.constant 0 : index
    %2 = arith.index_cast %1 : i32 to index
    %c0_0 = arith.constant 0 : index
    %c0_1 = arith.constant 0 : index
    %3 = vector.load %arg2[%c0, %2, %c0_0, %c0_1] : memref<1x18x16x128xf32, #tpu.memory_space<vmem>>, vector<1x10x16x128xf32>
    %4 = vector.shape_cast %3 : vector<1x10x16x128xf32> to vector<10x16x128xf32>
    %5 = vector.shape_cast %4 : vector<10x16x128xf32> to vector<160x128xf32>
    %c0_2 = arith.constant 0 : index
    %c0_3 = arith.constant 0 : index
    %6 = vector.load %arg3[%c0_2, %c0_3] : memref<128x128xf32, #tpu.memory_space<vmem>>, vector<128x128xf32>
    %cst = arith.constant dense<0.000000e+00> : vector<160x128xf32>
    %7 = tpu.matmul %5, %6, %cst {dimension_numbers = #tpu.dot_dimension_numbers<[1], [0], [0], [1], [0, 0, 1, 1], [], []>} : vector<160x128xf32>, vector<128x128xf32>, vector<160x128xf32> -> vector<160x128xf32>
    %c0_4 = arith.constant 0 : index
    %c0_5 = arith.constant 0 : index
    %8 = vector.load %arg4[%c0_4, %c0_5] : memref<1x128xf32, #tpu.memory_space<vmem>>, vector<1x128xf32>
    %9 = vector.broadcast %8 : vector<1x128xf32> to vector<160x128xf32>
    %10 = arith.addf %7, %9 : vector<160x128xf32>
    %cst_6 = arith.constant 0.000000e+00 : f32
    %11 = vector.broadcast %cst_6 : f32 to vector<160x128xf32>
    %12 = arith.maximumf %10, %11 : vector<160x128xf32>
    %13 = vector.shape_cast %12 : vector<160x128xf32> to vector<10x16x128xf32>
    %14 = tpu.iota {dimensions = array<i32: 0>} : vector<10x1x1xi32>
    %c8_i32_7 = arith.constant 8 : i32
    %15 = arith.muli %arg1, %c8_i32_7 : i32
    %c1_i32 = arith.constant 1 : i32
    %16 = arith.subi %15, %c1_i32 : i32
    %17 = vector.broadcast %16 : i32 to vector<10x1x1xi32>
    %18 = arith.addi %14, %17 : vector<10x1x1xi32>
    %c0_i32 = arith.constant 0 : i32
    %19 = vector.broadcast %c0_i32 : i32 to vector<10x1x1xi32>
    %20 = arith.cmpi sge, %18, %19 : vector<10x1x1xi32>
    %c16_i32 = arith.constant 16 : i32
    %21 = vector.broadcast %c16_i32 : i32 to vector<10x1x1xi32>
    %22 = arith.cmpi slt, %18, %21 : vector<10x1x1xi32>
    %23 = arith.andi %20, %22 : vector<10x1x1xi1>
    %cst_8 = arith.constant 0.000000e+00 : f32
    %24 = vector.shape_cast %23 : vector<10x1x1xi1> to vector<10x1x1xi1>
    %25 = vector.broadcast %24 : vector<10x1x1xi1> to vector<10x16x128xi1>
    %26 = vector.broadcast %cst_8 : f32 to vector<10x16x128xf32>
    %27 = arith.select %25, %13, %26 : vector<10x16x128xi1>, vector<10x16x128xf32>
    %c0_i32_9 = arith.constant 0 : i32
    %28 = arith.sitofp %c0_i32_9 : i32 to f32
    %29 = vector.broadcast %28 : f32 to vector<10x1x128xf32>
    %30 = tpu.concatenate %29, %27 in 1 : vector<10x1x128xf32>, vector<10x16x128xf32> -> vector<10x17x128xf32>
    %31 = vector.broadcast %28 : f32 to vector<10x1x128xf32>
    %32 = tpu.concatenate %30, %31 in 1 : vector<10x17x128xf32>, vector<10x1x128xf32> -> vector<10x18x128xf32>
    %33 = vector.extract_strided_slice %32 {offsets = [0, 0, 0], sizes = [10, 16, 128], strides = [1, 1, 1]} : vector<10x18x128xf32> to vector<10x16x128xf32>
    %34 = vector.extract_strided_slice %32 {offsets = [0, 2, 0], sizes = [10, 16, 128], strides = [1, 1, 1]} : vector<10x18x128xf32> to vector<10x16x128xf32>
    %35 = vector.extract_strided_slice %33 {offsets = [0, 0, 0], sizes = [8, 16, 128], strides = [1, 1, 1]} : vector<10x16x128xf32> to vector<8x16x128xf32>
    %36 = vector.extract_strided_slice %27 {offsets = [0, 0, 0], sizes = [8, 16, 128], strides = [1, 1, 1]} : vector<10x16x128xf32> to vector<8x16x128xf32>
    %37 = vector.extract_strided_slice %34 {offsets = [0, 0, 0], sizes = [8, 16, 128], strides = [1, 1, 1]} : vector<10x16x128xf32> to vector<8x16x128xf32>
    %38 = vector.extract_strided_slice %33 {offsets = [1, 0, 0], sizes = [8, 16, 128], strides = [1, 1, 1]} : vector<10x16x128xf32> to vector<8x16x128xf32>
    %39 = vector.extract_strided_slice %27 {offsets = [1, 0, 0], sizes = [8, 16, 128], strides = [1, 1, 1]} : vector<10x16x128xf32> to vector<8x16x128xf32>
    %40 = vector.extract_strided_slice %34 {offsets = [1, 0, 0], sizes = [8, 16, 128], strides = [1, 1, 1]} : vector<10x16x128xf32> to vector<8x16x128xf32>
    %41 = vector.extract_strided_slice %33 {offsets = [2, 0, 0], sizes = [8, 16, 128], strides = [1, 1, 1]} : vector<10x16x128xf32> to vector<8x16x128xf32>
    %42 = vector.extract_strided_slice %27 {offsets = [2, 0, 0], sizes = [8, 16, 128], strides = [1, 1, 1]} : vector<10x16x128xf32> to vector<8x16x128xf32>
    %43 = vector.extract_strided_slice %34 {offsets = [2, 0, 0], sizes = [8, 16, 128], strides = [1, 1, 1]} : vector<10x16x128xf32> to vector<8x16x128xf32>
    %44 = tpu.concatenate %35, %36, %37, %38, %39, %40, %41, %42, %43 in 2 : vector<8x16x128xf32>, vector<8x16x128xf32>, vector<8x16x128xf32>, vector<8x16x128xf32>, vector<8x16x128xf32>, vector<8x16x128xf32>, vector<8x16x128xf32>, vector<8x16x128xf32>, vector<8x16x128xf32> -> vector<8x16x1152xf32>
    %45 = vector.shape_cast %44 : vector<8x16x1152xf32> to vector<128x1152xf32>
    %c0_10 = arith.constant 0 : index
    %c0_11 = arith.constant 0 : index
    %46 = vector.load %arg5[%c0_10, %c0_11] : memref<1152x128xf32, #tpu.memory_space<vmem>>, vector<1152x128xf32>
    %cst_12 = arith.constant dense<0.000000e+00> : vector<128x128xf32>
    %47 = tpu.matmul %45, %46, %cst_12 {dimension_numbers = #tpu.dot_dimension_numbers<[1], [0], [0], [1], [0, 0, 1, 1], [], []>} : vector<128x1152xf32>, vector<1152x128xf32>, vector<128x128xf32> -> vector<128x128xf32>
    %c0_13 = arith.constant 0 : index
    %c0_14 = arith.constant 0 : index
    %48 = vector.load %arg6[%c0_13, %c0_14] : memref<1x128xf32, #tpu.memory_space<vmem>>, vector<1x128xf32>
    %49 = vector.broadcast %48 : vector<1x128xf32> to vector<128x128xf32>
    %50 = arith.addf %47, %49 : vector<128x128xf32>
    %cst_15 = arith.constant 0.000000e+00 : f32
    %51 = vector.broadcast %cst_15 : f32 to vector<128x128xf32>
    %52 = arith.maximumf %50, %51 : vector<128x128xf32>
    %c0_16 = arith.constant 0 : index
    %c0_17 = arith.constant 0 : index
    %53 = vector.load %arg7[%c0_16, %c0_17] : memref<128x128xf32, #tpu.memory_space<vmem>>, vector<128x128xf32>
    %cst_18 = arith.constant dense<0.000000e+00> : vector<128x128xf32>
    %54 = tpu.matmul %52, %53, %cst_18 {dimension_numbers = #tpu.dot_dimension_numbers<[1], [0], [0], [1], [0, 0, 1, 1], [], []>} : vector<128x128xf32>, vector<128x128xf32>, vector<128x128xf32> -> vector<128x128xf32>
    %55 = vector.extract_strided_slice %4 {offsets = [1, 0, 0], sizes = [8, 16, 128], strides = [1, 1, 1]} : vector<10x16x128xf32> to vector<8x16x128xf32>
    %56 = vector.shape_cast %55 : vector<8x16x128xf32> to vector<128x128xf32>
    %c0_19 = arith.constant 0 : index
    %c0_20 = arith.constant 0 : index
    %57 = vector.load %arg8[%c0_19, %c0_20] : memref<1x128xf32, #tpu.memory_space<vmem>>, vector<1x128xf32>
    %58 = vector.broadcast %57 : vector<1x128xf32> to vector<128x128xf32>
    %59 = arith.addf %54, %58 : vector<128x128xf32>
    %60 = arith.addf %59, %56 : vector<128x128xf32>
    %cst_21 = arith.constant 0.000000e+00 : f32
    %61 = vector.broadcast %cst_21 : f32 to vector<128x128xf32>
    %62 = arith.maximumf %60, %61 : vector<128x128xf32>
    %63 = vector.shape_cast %62 : vector<128x128xf32> to vector<8x16x128xf32>
    %c0_22 = arith.constant 0 : index
    %c0_23 = arith.constant 0 : index
    %c0_24 = arith.constant 0 : index
    %c0_25 = arith.constant 0 : index
    %64 = vector.load %arg9[%c0_22, %c0_23, %c0_24, %c0_25] : memref<1x8x16x128xf32, #tpu.memory_space<vmem>>, vector<1x8x16x128xf32>
    %65 = vector.shape_cast %64 : vector<1x8x16x128xf32> to vector<8x16x128xf32>
    %66 = vector.shape_cast %63 : vector<8x16x128xf32> to vector<1x8x16x128xf32>
    tpu.vector_store %arg9[%c0_22, %c0_23, %c0_24, %c0_25], %66 {strides = array<i32>} : memref<1x8x16x128xf32, #tpu.memory_space<vmem>>, vector<1x8x16x128xf32>,
    return
  }
  func.func @transform_0(%arg0: i32, %arg1: i32) -> (i32, i32, i32, i32) {
    %c0_i32 = arith.constant 0 : i32
    %c0_i32_0 = arith.constant 0 : i32
    %c0_i32_1 = arith.constant 0 : i32
    %c0_i32_2 = arith.constant 0 : i32
    return %arg0, %c0_i32, %c0_i32_0, %c0_i32_1 : i32, i32, i32, i32
  }
  func.func @transform_1(%arg0: i32, %arg1: i32) -> (i32, i32) {
    %c0_i32 = arith.constant 0 : i32
    %c0_i32_0 = arith.constant 0 : i32
    %c0_i32_1 = arith.constant 0 : i32
    return %c0_i32, %c0_i32_0 : i32, i32
  }
  func.func @transform_2(%arg0: i32, %arg1: i32) -> (i32, i32) {
    %c0_i32 = arith.constant 0 : i32
    %c0_i32_0 = arith.constant 0 : i32
    %c0_i32_1 = arith.constant 0 : i32
    return %c0_i32, %c0_i32_0 : i32, i32
  }
  func.func @transform_3(%arg0: i32, %arg1: i32) -> (i32, i32) {
    %c0_i32 = arith.constant 0 : i32
    %c0_i32_0 = arith.constant 0 : i32
    %c0_i32_1 = arith.constant 0 : i32
    return %c0_i32, %c0_i32_0 : i32, i32
  }
  func.func @transform_4(%arg0: i32, %arg1: i32) -> (i32, i32) {
    %c0_i32 = arith.constant 0 : i32
    %c0_i32_0 = arith.constant 0 : i32
    %c0_i32_1 = arith.constant 0 : i32
    return %c0_i32, %c0_i32_0 : i32, i32
  }
  func.func @transform_5(%arg0: i32, %arg1: i32) -> (i32, i32) {
    %c0_i32 = arith.constant 0 : i32
    %c0_i32_0 = arith.constant 0 : i32
    %c0_i32_1 = arith.constant 0 : i32
    return %c0_i32, %c0_i32_0 : i32, i32
  }
  func.func @transform_6(%arg0: i32, %arg1: i32) -> (i32, i32) {
    %c0_i32 = arith.constant 0 : i32
    %c0_i32_0 = arith.constant 0 : i32
    %c0_i32_1 = arith.constant 0 : i32
    return %c0_i32, %c0_i32_0 : i32, i32
  }
  func.func @transform_7(%arg0: i32, %arg1: i32) -> (i32, i32, i32, i32) {
    %c0_i32 = arith.constant 0 : i32
    %c0_i32_0 = arith.constant 0 : i32
    %c0_i32_1 = arith.constant 0 : i32
    return %arg0, %arg1, %c0_i32, %c0_i32_0 : i32, i32, i32, i32
  }
}

</mosaic_0001>

<bundles_post_ra>
// kernel: bottleneck_pallas.1
= control target key start
LH: loop header
LB: loop body
LE: loop exit
PB: predicated region body
PF: predicated region fallthrough
CT: control target
= control target key end

     0   :  { %s2886_s24 = smov 0   ;;  %s2888_s25 = smov 0   ;;  %s4382_s0 = inlined_call_operand.vmem [shape: f32[2,18,16,128], index: 0, kind: input, shape index: {}]   ;;  %s4383_s1 = inlined_call_operand.vmem [shape: f32[128,128], index: 1, kind: input, shape index: {}]   ;;  %s4384_s2 = inlined_call_operand.vmem [shape: f32[1,128], index: 2, kind: input, shape index: {}]   ;;  %s4385_s3 = inlined_call_operand.vmem [shape: f32[1152,128], index: 3, kind: input, shape index: {}]   ;;  %s4386_s4 = inlined_call_operand.vmem [shape: f32[1,128], index: 4, kind: input, shape index: {}]   ;;  %s4387_s5 = inlined_call_operand.vmem [shape: f32[128,128], index: 5, kind: input, shape index: {}]   ;;  %s4388_s6 = inlined_call_operand.vmem [shape: f32[1,128], index: 6, kind: input, shape index: {}]   ;;  %s4389_s7 = inlined_call_operand.vmem [shape: f32[2,16,16,128], index: 7, kind: output, shape index: {}]  }
   0x1   :  { %s2890_s26 = smov 0   ;;  %s2892_s27 = smov 0  }
   0x2   :  { %s2894_s28 = smov 0  }
   0x3 LB: > { %s26_s29 = sadd.s32 1, %s2836_s26  ;;  %s29_s30 = sadd.s32 1, %s2840_s27  ;;  %s2844_s28 = sphi %s2894_s28, %s17_s28   ;;  %s2840_s27 = sphi %s2892_s27, %s4485_s27   ;;  %s2836_s26 = sphi %s2890_s26, %s4484_s26   ;;  %s2832_s25 = sphi %s2888_s25, %s4483_s25   ;;  %s2828_s24 = sphi %s2886_s24, %s4482_s24  }
   0x4   : > { %p27_p0 = scmp.ge.s32.totalorder %s26_s29, 2  ;;  %p2012_p1 = scmp.ge.s32.totalorder %s2844_s28, 1 }
   0x5   : > { %p251_p2 = scmp.lt.s32.totalorder %s2844_s28, 5 }
   0x6   : > { %s4487_s29 = smov (%p27_p0, %s26_s29), 0  ;;  %s4489_s30 = smov (!%p27_p0, %s29_s30), %s2840_s27 }
   0x7   : > { %p252_p3 = pnand %p2012_p1, %p251_p2  ;;  %p31_p4 = scmp.ge.s32.totalorder %s4489_s30, 2 }
   0x9   : > { %s4491_s30 = smov (%p31_p4, %s4489_s30), 0  ;;  %255 = sbr.rel (%p252_p3) target bundleno = 807 (0x327), region = 48 }
   0xe   : > { %v342_v0 = vld [vmem:[%s4383_s1 + $0x78] sm:$0xff]  ;;  %v341_v1 = vld [vmem:[%s4383_s1 + $0x70] sm:$0xff]  ;;  %p288_p5 = scmp.lt.s32.totalorder %s2832_s25, 1  ;;  %v340_v2 = vld [vmem:[%s4383_s1 + $0x68] sm:$0xff]  ;;  %s2122_s17 = sshll.u32 %s2828_s24, 7  ;;  %vm636_vm3 = vcmask 1040384  }
   0xf   : > { %2543 = vmatprep.subr.mxu0 %v342_v0  ;;  %v339_v3 = vld [vmem:[%s4383_s1 + $0x60] sm:$0xff]  ;;  %v839_v4 = vld [vmem:[%s4385_s3 + $0xf8] sm:$0xff]  ;;  %v838_v7 = vld [vmem:[%s4385_s3 + $0xf0] sm:$0xff]  ;;  %s3194_s11 = sshll.u32 %s2828_s24, 3  ;;  %vm733_vm10 = vcmask 1045504  }
  0x10   : > { %2544 = vmatpush3.msra.mxu0 %v342_v0  ;;  %s4493_s25 = smov (!%p288_p5, %s2832_s25), 1  ;;  %v823_v5 = vld [vmem:[%s4385_s3 + $0x78] sm:$0xff]  ;;  %2159 = vmatprep.subr.mxu1 %v839_v4  ;;  %v822_v8 = vld [vmem:[%s4385_s3 + $0x70] sm:$0xff]  ;;  %v837_v11 = vld [vmem:[%s4385_s3 + $0xe8] sm:$0xff]  ;;  %s2021_s12 = sadd.s32 4294967295, %s3194_s11 }
  0x11   : > { %2545 = vmatprep.subr.mxu0 %v341_v1  ;;  %s2749_s16 = smul.u32 288, %s4493_s25  ;;  %v338_v6 = vld [vmem:[%s4383_s1 + $0x58] sm:$0xff]  ;;  %2160 = vmatpush3.msra.mxu1 %v823_v5  ;;  %v337_v9 = vld [vmem:[%s4383_s1 + $0x50] sm:$0xff]  ;;  %v821_v12 = vld [vmem:[%s4385_s3 + $0x68] sm:$0xff]  ;;  %p296_p6 = scmp.lt.s32.totalorder %s3194_s11, 15 }
  0x12   : > { %2546 = vmatpush3.msra.mxu0 %v341_v1  ;;  %2161 = vmatprep.subr.mxu1 %v838_v7  ;;  %v336_v13 = vld [vmem:[%s4383_s1 + $0x48] sm:$0xff]  ;;  %v836_v14 = vld [vmem:[%s4385_s3 + $0xe0] sm:$0xff]  ;;  %v334_v16 = vld [vmem:[%s4383_s1 + $0x38] sm:$0xff] }
  0x13   : > { %2547 = vmatprep.subr.mxu0 %v340_v2  ;;  %s292_s10 = scalar_lea.vmem %s4382_s0, %s2749_s16  ;;  %2162 = vmatpush3.msra.mxu1 %v822_v8  ;;  %v335_v15 = vld [vmem:[%s4383_s1 + $0x40] sm:$0xff]  ;;  %v835_v18 = vld [vmem:[%s4385_s3 + $0xd8] sm:$0xff]  ;;  %v333_v19 = vld [vmem:[%s4383_s1 + $0x30] sm:$0xff]  ;;  %s4495_s11 = smov (!%p296_p6, %s3194_s11), 15 }
  0x14   : > { %2548 = vmatpush3.msra.mxu0 %v340_v2  ;;  %s2949_s13 = scalar_lea.vmem %s292_s10, %s2122_s17  ;;  %2163 = vmatprep.subr.mxu1 %v837_v11  ;;  %v820_v17 = vld [vmem:[%s4385_s3 + $0x60] sm:$0xff]  ;;  %v819_v20 = vld [vmem:[%s4385_s3 + $0x58] sm:$0xff]  ;;  %v834_v21 = vld [vmem:[%s4385_s3 + $0xd0] sm:$0xff]  ;;  %s2015_s9 = sshll.u32 %s4495_s11, 1 }
  0x15   : > { %2549 = vmatprep.subr.mxu0 %v339_v3  ;;  %v307_v10 = vld [vmem:[%s2949_s13] sm:$0xff]  ;;  %2164 = vmatpush3.msra.mxu1 %v821_v12  ;;  %v818_v22 = vld [vmem:[%s4385_s3 + $0x50] sm:$0xff]  ;;  %v332_v23 = vld [vmem:[%s4383_s1 + $0x28] sm:$0xff]  ;;  %s2016_s10 = sshll.u32 %s4493_s25, 5 }
  0x16   : > { %2550 = vmatpush3.msra.mxu0 %v339_v3  ;;  %2575 = vmatprep.mubr.f32.mxu0 %v307_v10  ;;  %v833_v24 = vld [vmem:[%s4385_s3 + $0xc8] sm:$0xff]  ;;  %v832_v26 = vld [vmem:[%s4385_s3 + $0xc0] sm:$0xff]  ;;  %v831_v29 = vld [vmem:[%s4385_s3 + $0xb8] sm:$0xff] }
  0x17   : > { %2551 = vmatprep.subr.mxu0 %v338_v6  ;;  %2165 = vmatprep.subr.mxu1 %v836_v14  ;;  %v817_v25 = vld [vmem:[%s4385_s3 + $0x48] sm:$0xff]  ;;  %v331_v27 = vld [vmem:[%s4383_s1 + $0x20] sm:$0xff]  ;;  %v330_v30 = vld [vmem:[%s4383_s1 + $0x18] sm:$0xff] }
  0x18   : > { %2552 = vmatpush3.msra.mxu0 %v338_v6  ;;  %2166 = vmatpush3.msra.mxu1 %v820_v17  ;;  %v816_v28 = vld [vmem:[%s4385_s3 + $0x40] sm:$0xff]  ;;  %v815_v31 = vld [vmem:[%s4385_s3 + $0x38] sm:$0xff]  ;;  %v830_v32 = vld [vmem:[%s4385_s3 + $0xb0] sm:$0xff] }
  0x19   : > { %2553 = vmatprep.subr.mxu0 %v337_v9  ;;  %2167 = vmatprep.subr.mxu1 %v835_v18  ;;  %v329_v33 = vld [vmem:[%s4383_s1 + $0x10] sm:$0xff]  ;;  %v829_v35 = vld [vmem:[%s4385_s3 + $0xa8] sm:$0xff]  ;;  %v828_v38 = vld [vmem:[%s4385_s3 + $0xa0] sm:$0xff] }
  0x1a   : > { %2554 = vmatpush3.msra.mxu0 %v337_v9  ;;  %2168 = vmatpush3.msra.mxu1 %v819_v20  ;;  %v814_v34 = vld [vmem:[%s4385_s3 + $0x30] sm:$0xff]  ;;  %v328_v36 = vld [vmem:[%s4383_s1 + $0x8] sm:$0xff]  ;;  %v327_v39 = vld [vmem:[%s4383_s1] sm:$0xff] }
  0x1b   : > { %2555 = vmatprep.subr.mxu0 %v336_v13  ;;  %2169 = vmatprep.subr.mxu1 %v834_v21  ;;  %v813_v37 = vld [vmem:[%s4385_s3 + $0x28] sm:$0xff]  ;;  %v871_v41 = vld [vmem:[%s4385_s3 + $0x1f8] sm:$0xff]  ;;  %v309_v42 = vld [vmem:[%s2949_s13 + $0x10] sm:$0xff] }
  0x1c   : > { %2556 = vmatpush3.msra.mxu0 %v336_v13  ;;  %2170 = vmatpush3.msra.mxu1 %v818_v22  ;;  %v308_v40 = vld [vmem:[%s2949_s13 + $0x8] sm:$0xff]  ;;  %v855_v43 = vld [vmem:[%s4385_s3 + $0x178] sm:$0xff]  ;;  %v870_v44 = vld [vmem:[%s4385_s3 + $0x1f0] sm:$0xff] }
  0x1d   : > { %2557 = vmatprep.subr.mxu0 %v335_v15  ;;  %2171 = vmatprep.subr.mxu1 %v833_v24  ;;  %v854_v45 = vld [vmem:[%s4385_s3 + $0x170] sm:$0xff]  ;;  %v310_v46 = vld [vmem:[%s2949_s13 + $0x18] sm:$0xff]  ;;  %v869_v47 = vld [vmem:[%s4385_s3 + $0x1e8] sm:$0xff] }
  0x1e   : > { %2558 = vmatpush3.msra.mxu0 %v335_v15  ;;  %2172 = vmatpush3.msra.mxu1 %v817_v25  ;;  %v311_v48 = vld [vmem:[%s2949_s13 + $0x20] sm:$0xff]  ;;  %v853_v49 = vld [vmem:[%s4385_s3 + $0x168] sm:$0xff]  ;;  %v867_v53 = vld [vmem:[%s4385_s3 + $0x1d8] sm:$0xff] }
  0x1f   : > { %2559 = vmatprep.subr.mxu0 %v334_v16  ;;  %2173 = vmatprep.subr.mxu1 %v832_v26  ;;  %v868_v50 = vld [vmem:[%s4385_s3 + $0x1e0] sm:$0xff]  ;;  %v312_v52 = vld [vmem:[%s2949_s13 + $0x28] sm:$0xff]  ;;  %v313_v54 = vld [vmem:[%s2949_s13 + $0x30] sm:$0xff] }
  0x20   : > { %2560 = vmatpush3.msra.mxu0 %v334_v16  ;;  %2174 = vmatpush3.msra.mxu1 %v816_v28  ;;  %v852_v51 = vld [vmem:[%s4385_s3 + $0x160] sm:$0xff]  ;;  %v851_v55 = vld [vmem:[%s4385_s3 + $0x158] sm:$0xff]  ;;  %v866_v56 = vld [vmem:[%s4385_s3 + $0x1d0] sm:$0xff] }
  0x21   : > { %2561 = vmatprep.subr.mxu0 %v333_v19  ;;  %2175 = vmatprep.subr.mxu1 %v831_v29  ;;  %v850_v57 = vld [vmem:[%s4385_s3 + $0x150] sm:$0xff]  ;;  %v314_v58 = vld [vmem:[%s2949_s13 + $0x38] sm:$0xff]  ;;  %v865_v59 = vld [vmem:[%s4385_s3 + $0x1c8] sm:$0xff] }
  0x22   : > { %2562 = vmatpush3.msra.mxu0 %v333_v19  ;;  %2176 = vmatpush3.msra.mxu1 %v815_v31  ;;  %v315_v60 = vld [vmem:[%s2949_s13 + $0x40] sm:$0xff]  ;;  %v849_v61 = vld [vmem:[%s4385_s3 + $0x148] sm:$0xff]  ;;  %v863_v1 = vld [vmem:[%s4385_s3 + $0x1b8] sm:$0xff] }
  0x23   : > { %2563 = vmatprep.subr.mxu0 %v332_v23  ;;  %2177 = vmatprep.subr.mxu1 %v830_v32  ;;  %v864_v62 = vld [vmem:[%s4385_s3 + $0x1c0] sm:$0xff]  ;;  %v316_v0 = vld [vmem:[%s2949_s13 + $0x48] sm:$0xff]  ;;  %v317_v2 = vld [vmem:[%s2949_s13 + $0x50] sm:$0xff] }
  0x24   : > { %2564 = vmatpush3.msra.mxu0 %v332_v23  ;;  %2178 = vmatpush3.msra.mxu1 %v814_v34  ;;  %v848_v63 = vld [vmem:[%s4385_s3 + $0x140] sm:$0xff]  ;;  %v318_v3 = vld [vmem:[%s2949_s13 + $0x58] sm:$0xff]  ;;  %v320_v5 = vld [vmem:[%s2949_s13 + $0x68] sm:$0xff] }
  0x25   : > { %2565 = vmatprep.subr.mxu0 %v331_v27  ;;  %2179 = vmatprep.subr.mxu1 %v829_v35  ;;  %v319_v4 = vld [vmem:[%s2949_s13 + $0x60] sm:$0xff]  ;;  %v321_v6 = vld [vmem:[%s2949_s13 + $0x70] sm:$0xff]  ;;  %v322_v7 = vld [vmem:[%s2949_s13 + $0x78] sm:$0xff] }
  0x26   : > { %2566 = vmatpush3.msra.mxu0 %v331_v27  ;;  %2180 = vmatpush3.msra.mxu1 %v813_v37  ;;  %v323_v8 = vld [vmem:[%s2949_s13 + $0x80] sm:$0xff]  ;;  %v324_v9 = vld [vmem:[%s2949_s13 + $0x88] sm:$0xff]  ;;  %v325_v10 = vld [vmem:[%s2949_s13 + $0x90] sm:$0xff] }
  0x27   : > { %2567 = vmatprep.subr.mxu0 %v330_v30  ;;  %2181 = vmatprep.subr.mxu1 %v828_v38  ;;  %v326_v11 = vld [vmem:[%s2949_s13 + $0x98] sm:$0xff]  ;;  %v812_v13 = vld [vmem:[%s4385_s3 + $0x20] sm:$0xff]  ;;  %v862_v14 = vld [vmem:[%s4385_s3 + $0x1b0] sm:$0xff]  ;;  %v3197_v38 = vstv %s2021_s12  ;;  %s300_s12 = sadd.s32 %s2016_s10, %s2015_s9 }
  0x28   : > { %2568 = vmatpush3.msra.mxu0 %v330_v30  ;;  %v847_v12 = vld [vmem:[%s4385_s3 + $0x138] sm:$0xff]  ;;  %2182 = vmatpush3.msra.mxu1 %v812_v13  ;;  %v846_v16 = vld [vmem:[%s4385_s3 + $0x130] sm:$0xff]  ;;  %v861_v18 = vld [vmem:[%s4385_s3 + $0x1a8] sm:$0xff]  ;;  %vm546_vm0 = vcmp.ge.s32.totalorder %v3197_v38, 0  ;;  %vm556_vm1 = vcmp.lt.s32.totalorder %v3197_v38, 16  ;;  %s2017_s24 = sshll.u32 %s300_s12, 3 }
  0x29   : > { %2569 = vmatprep.subr.mxu0 %v329_v33  ;;  %v827_v15 = vld [vmem:[%s4385_s3 + $0x98] sm:$0xff]  ;;  %v826_v19 = vld [vmem:[%s4385_s3 + $0x90] sm:$0xff]  ;;  %v845_v20 = vld [vmem:[%s4385_s3 + $0x128] sm:$0xff]  ;;  %s4320_s25 = scalar_lea.vmem %s4389_s7, %s2017_s24 }
  0x2a   : > { %2570 = vmatpush3.msra.mxu0 %v329_v33  ;;  %2183 = vmatprep.subr.mxu1 %v827_v15  ;;  %v811_v17 = vld [vmem:[%s4385_s3 + $0x18] sm:$0xff]  ;;  %v810_v21 = vld [vmem:[%s4385_s3 + $0x10] sm:$0xff]  ;;  %v860_v22 = vld [vmem:[%s4385_s3 + $0x1a0] sm:$0xff] }
  0x2b   : > { %2571 = vmatprep.subr.mxu0 %v328_v36  ;;  %2184 = vmatpush3.msra.mxu1 %v811_v17  ;;  %v825_v23 = vld [vmem:[%s4385_s3 + $0x88] sm:$0xff]  ;;  %v844_v24 = vld [vmem:[%s4385_s3 + $0x120] sm:$0xff]  ;;  %v859_v26 = vld [vmem:[%s4385_s3 + $0x198] sm:$0xff] }
  0x2c   : > { %2572 = vmatpush3.msra.mxu0 %v328_v36  ;;  %2185 = vmatprep.subr.mxu1 %v826_v19  ;;  %v809_v25 = vld [vmem:[%s4385_s3 + $0x8] sm:$0xff]  ;;  %v824_v27 = vld [vmem:[%s4385_s3 + $0x80] sm:$0xff]  ;;  %v843_v28 = vld [vmem:[%s4385_s3 + $0x118] sm:$0xff] }
  0x2d   : > { %2573 = vmatprep.subr.mxu0 %v327_v39  ;;  %2186 = vmatpush3.msra.mxu1 %v810_v21  ;;  %v808_v29 = vld [vmem:[%s4385_s3] sm:$0xff]  ;;  %v858_v30 = vld [vmem:[%s4385_s3 + $0x190] sm:$0xff]  ;;  %v857_v32 = vld [vmem:[%s4385_s3 + $0x188] sm:$0xff] }
  0x2e   : > { %2574 = vmatpush3.msra.mxu0 %v327_v39  ;;  %2187 = vmatprep.subr.mxu1 %v825_v23  ;;  %v842_v31 = vld [vmem:[%s4385_s3 + $0x110] sm:$0xff]  ;;  %v841_v33 = vld [vmem:[%s4385_s3 + $0x108] sm:$0xff]  ;;  %v903_v34 = vld [vmem:[%s4385_s3 + $0x2f8] sm:$0xff] }
  0x2f   : > { %2576 = vmatmul.mubr.f32.vlgmr.msra.gmra.mxu0 %v308_v40  ;;  %2239 = vmatprep.subr.mxu0 %v871_v41  ;;  %v856_v35 = vld [vmem:[%s4385_s3 + $0x180] sm:$0xff]  ;;  %v935_v37 = vld [vmem:[%s4385_s3 + $0x3f8] sm:$0xff]  ;;  %v537_v41 = vadd.s32 1, %v3197_v38  ;;  %vm3208_vm2 = vmand %vm546_vm0, %vm556_vm1 }
  0x30   : > { %2578 = vmatprep.mubr.f32.mxu0 %v309_v42  ;;  %2240 = vmatpush3.msra.mxu0 %v855_v43  ;;  %v840_v36 = vld [vmem:[%s4385_s3 + $0x100] sm:$0xff]  ;;  %vm3225_vm6 = vmneg %vm636_vm3  ;;  %v885_v21 = vld [vmem:[%s4385_s3 + $0x268] sm:$0xff] }
  0x31   : > { %2241 = vmatprep.subr.mxu0 %v870_v44  ;;  %2188 = vmatpush3.msra.mxu1 %v809_v25  ;;  %v3202_v39 = vld [vmem:[%s4384_s2] ss:$0 sm:$0xff]  ;;  %vm547_vm4 = vcmp.ge.s32.totalorder %v537_v41, 0  ;;  %vm557_vm5 = vcmp.lt.s32.totalorder %v537_v41, 16  ;;  %v919_v25 = vld [vmem:[%s4385_s3 + $0x378] sm:$0xff]  ;;  %v942_v13 = vld [vmem:[%s4385_s3 + $0x430] sm:$0xff] }
  0x32   : > { %2242 = vmatpush3.msra.mxu0 %v854_v45  ;;  %2189 = vmatprep.subr.mxu1 %v824_v27  ;;  %vm3229_vm7 = vmand %vm547_vm4, %vm557_vm5  ;;  %v900_v27 = vld [vmem:[%s4385_s3 + $0x2e0] sm:$0xff]  ;;  %v899_v43 = vld [vmem:[%s4385_s3 + $0x2d8] sm:$0xff] }
  0x33   : > { %2579 = vmatmul.mubr.f32.gmra.mxu0 %v310_v46  ;;  %2243 = vmatprep.subr.mxu0 %v869_v47  ;;  %v938_v41 = vld [vmem:[%s4385_s3 + $0x410] sm:$0xff] }
  0x34   : > { %2581 = vmatprep.mubr.f32.mxu0 %v311_v48  ;;  %2244 = vmatpush3.msra.mxu0 %v853_v49  ;;  %v538_v48 = vadd.s32 2, %v3197_v38 }
  0x35   : > { %2245 = vmatprep.subr.mxu0 %v868_v50  ;;  %2190 = vmatpush3.msra.mxu1 %v808_v29 }
  0x36   : > { %2246 = vmatpush3.msra.mxu0 %v852_v51  ;;  %2319 = vmatprep.subr.mxu1 %v903_v34  ;;  %vm548_vm8 = vcmp.ge.s32.totalorder %v538_v48, 0  ;;  %vm558_vm9 = vcmp.lt.s32.totalorder %v538_v48, 16  ;;  %v884_v34 = vld [vmem:[%s4385_s3 + $0x260] sm:$0xff]  ;;  %v918_v48 = vld [vmem:[%s4385_s3 + $0x370] sm:$0xff] }
  0x37   : > { %2582 = vmatmul.mubr.f32.gmra.mxu0 %v312_v52  ;;  %2247 = vmatprep.subr.mxu0 %v867_v53  ;;  %vm3263_vm11 = vmand %vm548_vm8, %vm558_vm9 }
  0x38   : > { %2584 = vmatprep.mubr.f32.mxu0 %v313_v54  ;;  %2248 = vmatpush3.msra.mxu0 %v851_v55 }
  0x39   : > { %2249 = vmatprep.subr.mxu0 %v866_v56 }
  0x3a   : > { %2250 = vmatpush3.msra.mxu0 %v850_v57 }
  0x3b   : > { %2585 = vmatmul.mubr.f32.gmra.mxu0 %v314_v58  ;;  %2251 = vmatprep.subr.mxu0 %v865_v59  ;;  %v946_v59 = vld [vmem:[%s4385_s3 + $0x450] sm:$0xff] }
  0x3c   : > { %2587 = vmatprep.mubr.f32.mxu0 %v315_v60  ;;  %2252 = vmatpush3.msra.mxu0 %v849_v61  ;;  %v887_v60 = vld [vmem:[%s4385_s3 + $0x278] sm:$0xff] }
  0x3d   : > { %2253 = vmatprep.subr.mxu0 %v864_v62 }
  0x3e   : > { %2254 = vmatpush3.msra.mxu0 %v848_v63 }
  0x3f   : > { %2588 = vmatmul.mubr.f32.gmra.mxu0 %v316_v0  ;;  %2255 = vmatprep.subr.mxu0 %v863_v1  ;;  %v902_v1 = vld [vmem:[%s4385_s3 + $0x2f0] sm:$0xff] }
  0x40   : > { %2590 = vmatprep.mubr.f32.mxu0 %v317_v2  ;;  %2256 = vmatpush3.msra.mxu0 %v847_v12  ;;  %v539_v2 = vadd.s32 3, %v3197_v38 }
  0x41   : > { %2257 = vmatprep.subr.mxu0 %v862_v14 }
  0x42   : > { %2258 = vmatpush3.msra.mxu0 %v846_v16  ;;  %vm549_vm12 = vcmp.ge.s32.totalorder %v539_v2, 0  ;;  %vm559_vm13 = vcmp.lt.s32.totalorder %v539_v2, 16  ;;  %v917_v2 = vld [vmem:[%s4385_s3 + $0x368] sm:$0xff] }
  0x43   : > { %2591 = vmatmul.mubr.f32.gmra.mxu0 %v318_v3  ;;  %2259 = vmatprep.subr.mxu0 %v861_v18  ;;  %v901_v18 = vld [vmem:[%s4385_s3 + $0x2e8] sm:$0xff]  ;;  %vm3316_vm14 = vmand %vm549_vm12, %vm559_vm13 }
  0x44   : > { %2593 = vmatprep.mubr.f32.mxu0 %v319_v4  ;;  %2260 = vmatpush3.msra.mxu0 %v845_v20 }
  0x45   : > { %2261 = vmatprep.subr.mxu0 %v860_v22 }
  0x46   : > { %2262 = vmatpush3.msra.mxu0 %v844_v24 }
  0x47   : > { %2594 = vmatmul.mubr.f32.gmra.mxu0 %v320_v5  ;;  %2263 = vmatprep.subr.mxu0 %v859_v26 }
  0x48   : > { %2596 = vmatprep.mubr.f32.mxu0 %v321_v6  ;;  %2264 = vmatpush3.msra.mxu0 %v843_v28 }
  0x49   : > { %2265 = vmatprep.subr.mxu0 %v858_v30 }
  0x4a   : > { %2266 = vmatpush3.msra.mxu0 %v842_v31 }
  0x4b   : > { %2597 = vmatmul.mubr.f32.gmra.mxu0 %v322_v7  ;;  %2267 = vmatprep.subr.mxu0 %v857_v32  ;;  %v886_v7 = vld [vmem:[%s4385_s3 + $0x270] sm:$0xff] }
  0x4c   : > { %2599 = vmatprep.mubr.f32.mxu0 %v323_v8  ;;  %2268 = vmatpush3.msra.mxu0 %v841_v33 }
  0x4d   : > { %2269 = vmatprep.subr.mxu0 %v856_v35 }
  0x4e   : > { %2270 = vmatpush3.msra.mxu0 %v840_v36 }
  0x4f   : > { %2600 = vmatmul.mubr.f32.gmra.mxu0 %v324_v9  ;;  %2399 = vmatprep.subr.mxu0 %v935_v37 }
  0x50   : > { %2602 = vmatprep.mubr.f32.mxu0 %v325_v10 }
  0x53   : > { %2603 = vmatmul.mubr.f32.gmra.mxu0 %v326_v11 }
  0xef   : > { %v2577_v40 = vpop.f32.mrf.mxu0 }
  0xf0   : > { %v422_v42 = vadd.f32 %v2577_v40, %v3202_v39 }
  0xf1   : > { %v416_v44 = vpop.f32.mrf.mxu0 }
  0xf2   : > { %v516_v45 = vmax.f32 %v422_v42, 0.0  ;;  %v417_v46 = vadd.f32 %v3202_v39, %v416_v44 }
  0xf3   : > { %v2580_v47 = vpop.f32.mrf.mxu0 }
  0xf4   : > { %v597_v49 = vsel %vm3208_vm2, %v516_v45, 0.0  ;;  %v515_v50 = vmax.f32 %v417_v46, 0.0  ;;  %v432_v51 = vadd.f32 %v2580_v47, %v3202_v39  ;;  %v540_v47 = vadd.s32 4, %v3197_v38 }
  0xf5   : > { %v426_v52 = vpop.f32.mrf.mxu0  ;;  %v638_v57 = vrot.slane %v597_v49, 7 }
  0xf6   : > { %v596_v53 = vsel %vm3208_vm2, %v515_v50, 0.0  ;;  %v3219_v54 = vmax.f32 %v432_v51, 0.0  ;;  %v427_v55 = vadd.f32 %v3202_v39, %v426_v52  ;;  %2023 = vmatprep.mubr.msk.f32.mxu1 %vm3208_vm2, %v515_v50  ;;  %v883_v52 = vld [vmem:[%s4385_s3 + $0x258] sm:$0xff]  ;;  %vm550_vm15 = vcmp.ge.s32.totalorder %v540_v47, 0 }
  0xf7   : > { %v637_v58 = vrot.slane %v596_v53, 7  ;;  %v2583_v61 = vpop.f32.mrf.mxu0  ;;  %v707_v16 = vsel %vm636_vm3, %v638_v57, 0.0  ;;  %vm560_vm0 = vcmp.lt.s32.totalorder %v540_v47, 16 }
  0xf8   : > { %v599_v62 = vsel %vm3229_vm7, %v3219_v54, 0.0  ;;  %v3239_v63 = vmax.f32 %v427_v55, 0.0  ;;  %v442_v0 = vadd.f32 %v2583_v61, %v3202_v39  ;;  %v737_v30 = vrot.slane %v707_v16, 2  ;;  %vm3391_vm1 = vmand %vm550_vm15, %vm560_vm0 }
  0xf9   : > { %v697_v3 = vsel %vm636_vm3, 0.0, %v637_v58  ;;  %v641_v4 = vrot.slane %v599_v62, 7  ;;  %2025 = vmatmul.mubr.msk.f32.vlgmr.msra.gmra.mxu1 %vm3225_vm6, %v637_v58  ;;  %v436_v5 = vpop.f32.mrf.mxu0  ;;  %v639_v6 = vsel %vm636_vm3, %v637_v58, %v638_v57 }
  0xfa   : > { %v734_v8 = vrot.slane %v697_v3, 2  ;;  %v598_v9 = vsel %vm3229_vm7, %v3239_v63, 0.0  ;;  %2320 = vmatpush3.msra.mxu1 %v887_v60  ;;  %2026 = vmatprep.mubr.msk.f32.mxu1 %vm3208_vm2, %v516_v45  ;;  %v3258_v10 = vmax.f32 %v442_v0, 0.0  ;;  %v437_v11 = vadd.f32 %v3202_v39, %v436_v5  ;;  %v934_v45 = vld [vmem:[%s4385_s3 + $0x3f0] sm:$0xff]  ;;  %v933_v0 = vld [vmem:[%s4385_s3 + $0x3e8] sm:$0xff] }
  0xfb   : > { %v640_v12 = vrot.slane %v598_v9, 7  ;;  %2321 = vmatprep.subr.mxu1 %v902_v1  ;;  %v735_v14 = vrot.slane %v639_v6, 2  ;;  %v2586_v15 = vpop.f32.mrf.mxu0  ;;  %v708_v46 = vsel %vm636_vm3, %v641_v4, 0.0  ;;  %v898_v60 = vld [vmem:[%s4385_s3 + $0x2d0] sm:$0xff] }
  0xfc   : > { %v3268_v17 = vmax.f32 %v437_v11, 0.0  ;;  %2322 = vmatpush3.msra.mxu1 %v886_v7  ;;  %v452_v22 = vadd.f32 %v2586_v15, %v3202_v39  ;;  %v601_v24 = vsel %vm3263_vm11, %v3258_v10, 0.0  ;;  %v742_v57 = vrot.slane %v708_v46, 2  ;;  %v897_v15 = vld [vmem:[%s4385_s3 + $0x2c8] sm:$0xff]  ;;  %v880_v46 = vld [vmem:[%s4385_s3 + $0x240] sm:$0xff] }
  0xfd   : > { %1029 = vmatmul.mubr.f32.gmra.mxu1 %v639_v6  ;;  %2056 = vmatprep.mubr.msk.f32.mxu0 %vm3225_vm6, %v640_v12  ;;  %v736_v19 = vsel %vm733_vm10, %v734_v8, %v735_v14  ;;  %v3277_v20 = vsel %vm636_vm3, %v640_v12, %v641_v4  ;;  %v446_v23 = vpop.f32.mrf.mxu0  ;;  %v698_v29 = vsel %vm636_vm3, 0.0, %v640_v12  ;;  %v644_v35 = vrot.slane %v601_v24, 7  ;;  %v882_v6 = vld [vmem:[%s4385_s3 + $0x250] sm:$0xff] }
  0xfe   : > { %v600_v26 = vsel %vm3263_vm11, %v3268_v17, 0.0  ;;  %2027 = vmatprep.mubr.msk.f32.mxu1 %vm3229_vm7, %v3239_v63  ;;  %1169 = vmatmul.mubr.f32.vlgmr.msra.gmra.mxu0 %v736_v19  ;;  %v447_v28 = vadd.f32 %v3202_v39, %v446_v23  ;;  %v740_v36 = vrot.slane %v3277_v20, 2  ;;  %v738_v37 = vsel %vm733_vm10, %v735_v14, %v737_v30  ;;  %v896_v30 = vld [vmem:[%s4385_s3 + $0x2c0] sm:$0xff] }
  0xff   : > { %v3300_v31 = vrot.slane %v600_v26, 7  ;;  %1173 = vmatprep.mubr.f32.mxu0 %v3277_v20  ;;  %2323 = vmatprep.subr.mxu1 %v901_v18  ;;  %v2589_v32 = vpop.f32.mrf.mxu0  ;;  %v3312_v40 = vmax.f32 %v452_v22, 0.0  ;;  %v739_v42 = vrot.slane %v698_v29, 2  ;;  %v932_v18 = vld [vmem:[%s4385_s3 + $0x3e0] sm:$0xff]  ;;  %v709_v19 = vsel %vm636_vm3, %v644_v35, 0.0 }
 0x100   : > { %2324 = vmatpush3.msra.mxu1 %v885_v21  ;;  %v3303_v33 = vmax.f32 %v447_v28, 0.0  ;;  %2400 = vmatpush3.msra.mxu0 %v919_v25  ;;  %v462_v58 = vadd.f32 %v2589_v32, %v3202_v39  ;;  %v3385_v8 = vsel %vm733_vm10, %v740_v36, %v742_v57  ;;  %v916_v21 = vld [vmem:[%s4385_s3 + $0x360] sm:$0xff]  ;;  %v881_v25 = vld [vmem:[%s4385_s3 + $0x248] sm:$0xff]  ;;  %v747_v29 = vrot.slane %v709_v19, 2  ;;  %v895_v57 = vld [vmem:[%s4385_s3 + $0x2b8] sm:$0xff] }
 0x101   : > { %2029 = vmatmul.mubr.msk.f32.gmra.mxu1 %vm3225_vm6, %v640_v12  ;;  %2325 = vmatprep.subr.mxu1 %v900_v27  ;;  %v456_v44 = vpop.f32.mrf.mxu0  ;;  %v3342_v51 = vsel %vm636_vm3, %v3300_v31, %v644_v35  ;;  %v3350_v55 = vsel %vm733_vm10, %v739_v42, %v740_v36  ;;  %v603_v61 = vsel %vm3316_vm14, %v3312_v40, 0.0  ;;  %v699_v1 = vsel %vm636_vm3, 0.0, %v3300_v31  ;;  %v931_v35 = vld [vmem:[%s4385_s3 + $0x3d8] sm:$0xff]  ;;  %v894_v19 = vld [vmem:[%s4385_s3 + $0x2b0] sm:$0xff] }
 0x102   : > { %2030 = vmatprep.mubr.msk.f32.mxu1 %vm3229_vm7, %v3219_v54  ;;  %1174 = vmatmul.mubr.f32.gmra.mxu0 %v738_v37  ;;  %v602_v50 = vsel %vm3316_vm14, %v3303_v33, 0.0  ;;  %v457_v53 = vadd.f32 %v3202_v39, %v456_v44  ;;  %v647_v7 = vrot.slane %v603_v61, 7  ;;  %v3387_v9 = vmax.f32 %v462_v58, 0.0  ;;  %v915_v37 = vld [vmem:[%s4385_s3 + $0x358] sm:$0xff]  ;;  %v930_v58 = vld [vmem:[%s4385_s3 + $0x3d0] sm:$0xff] }
 0x103   : > { %2058 = vmatprep.mubr.msk.f32.mxu0 %vm3225_vm6, %v3300_v31  ;;  %2326 = vmatpush3.msra.mxu1 %v884_v34  ;;  %v2592_v49 = vpop.f32.mrf.mxu0  ;;  %v3371_v3 = vrot.slane %v602_v50, 7  ;;  %v744_v12 = vrot.slane %v699_v1, 2  ;;  %v745_v14 = vrot.slane %v3342_v51, 2  ;;  %v545_v61 = vadd.s32 9, %v3197_v38 }
 0x104   : > { %2327 = vmatprep.subr.mxu1 %v899_v43  ;;  %2401 = vmatprep.subr.mxu0 %v934_v45  ;;  %v3376_v5 = vmax.f32 %v457_v53, 0.0  ;;  %v472_v26 = vadd.f32 %v2592_v49, %v3202_v39  ;;  %v605_v32 = vsel %vm3391_vm1, %v3387_v9, 0.0 }
 0x105   : > { %1039 = vmatmul.mubr.f32.gmra.mxu1 %v3277_v20  ;;  %v466_v62 = vpop.f32.mrf.mxu0  ;;  %2402 = vmatpush3.msra.mxu0 %v918_v48  ;;  %v541_v20 = vadd.s32 5, %v3197_v38  ;;  %v3423_v24 = vsel %vm636_vm3, %v3371_v3, %v647_v7  ;;  %v3432_v28 = vsel %vm733_vm10, %v744_v12, %v745_v14  ;;  %v700_v36 = vsel %vm636_vm3, 0.0, %v3371_v3 }
 0x106   : > { %2031 = vmatprep.mubr.msk.f32.mxu1 %vm3263_vm11, %v3268_v17  ;;  %1179 = vmatmul.mubr.f32.gmra.mxu0 %v3350_v55  ;;  %v604_v23 = vsel %vm3391_vm1, %v3376_v5, 0.0  ;;  %v467_v27 = vadd.f32 %v3202_v39, %v466_v62  ;;  %v3459_v44 = vmax.f32 %v472_v26, 0.0  ;;  %v650_v47 = vrot.slane %v605_v32, 7 }
 0x107   : > { %1183 = vmatprep.mubr.f32.mxu0 %v3342_v51  ;;  %2328 = vmatpush3.msra.mxu1 %v883_v52  ;;  %v3374_v4 = vpop.f32.mrf.mxu0  ;;  %vm551_vm2 = vcmp.ge.s32.totalorder %v541_v20, 0  ;;  %vm561_vm4 = vcmp.lt.s32.totalorder %v541_v20, 16  ;;  %v3454_v42 = vrot.slane %v604_v23, 7  ;;  %v710_v48 = vsel %vm636_vm3, %v647_v7, 0.0  ;;  %v929_v20 = vld [vmem:[%s4385_s3 + $0x3c8] sm:$0xff] }
 0x108   : > { %2329 = vmatprep.subr.mxu1 %v898_v60  ;;  %2403 = vmatprep.subr.mxu0 %v933_v0  ;;  %v3461_v45 = vmax.f32 %v467_v27, 0.0  ;;  %v3471_v49 = vsel %vm733_vm10, %v745_v14, %v747_v29  ;;  %vm3475_vm5 = vmand %vm551_vm2, %vm561_vm4  ;;  %v749_v52 = vrot.slane %v700_v36, 2  ;;  %v750_v53 = vrot.slane %v3423_v24, 2  ;;  %v914_v0 = vld [vmem:[%s4385_s3 + $0x350] sm:$0xff]  ;;  %v879_v14 = vld [vmem:[%s4385_s3 + $0x238] sm:$0xff] }
 0x109   : > { %2033 = vmatmul.mubr.msk.f32.gmra.mxu1 %vm3225_vm6, %v3300_v31  ;;  %v3399_v16 = vpop.f32.mrf.mxu0  ;;  %2404 = vmatpush3.msra.mxu0 %v917_v2  ;;  %v542_v62 = vadd.s32 6, %v3197_v38  ;;  %v752_v1 = vrot.slane %v710_v48, 2  ;;  %v482_v2 = vadd.f32 %v3374_v4, %v3202_v39  ;;  %v3507_v12 = vsel %vm636_vm3, %v3454_v42, %v650_v47  ;;  %v1711_v48 = vld [vmem:[%s4387_s5 + $0x58] sm:$0xff] }
 0x10a   : > { %2034 = vmatprep.mubr.msk.f32.mxu1 %vm3263_vm11, %v3258_v10  ;;  %1184 = vmatmul.mubr.f32.gmra.mxu0 %v3385_v8  ;;  %v606_v7 = vsel %vm3475_vm5, %v3461_v45, 0.0  ;;  %v607_v4 = vsel %vm3475_vm5, %v3459_v44, 0.0  ;;  %vm555_vm8 = vcmp.ge.s32.totalorder %v545_v61, 0  ;;  %vm565_vm9 = vcmp.lt.s32.totalorder %v545_v61, 16 }
 0x10b   : > { %2060 = vmatprep.mubr.msk.f32.mxu0 %vm3225_vm6, %v3371_v3  ;;  %2330 = vmatpush3.msra.mxu1 %v882_v6  ;;  %v3416_v22 = vpop.f32.mrf.mxu0  ;;  %vm552_vm12 = vcmp.ge.s32.totalorder %v542_v62, 0  ;;  %vm562_vm13 = vcmp.lt.s32.totalorder %v542_v62, 16  ;;  %v3534_v23 = vsel %vm636_vm3, %v650_v47, 0.0  ;;  %v3539_v26 = vrot.slane %v606_v7, 7  ;;  %vm3563_vm15 = vmand %vm555_vm8, %vm565_vm9 }
 0x10c   : > { %2331 = vmatprep.subr.mxu1 %v897_v15  ;;  %2405 = vmatprep.subr.mxu0 %v932_v18  ;;  %v477_v15 = vadd.f32 %v3202_v39, %v3399_v16  ;;  %v3519_v18 = vsel %vm733_vm10, %v749_v52, %v750_v53  ;;  %v3542_v27 = vrot.slane %v607_v4, 7  ;;  %v3551_v32 = vsel %vm733_vm10, %v750_v53, %v752_v1  ;;  %vm3572_vm0 = vmand %vm552_vm12, %vm562_vm13  ;;  %v912_v1 = vld [vmem:[%s4385_s3 + $0x340] sm:$0xff]  ;;  %v877_v4 = vld [vmem:[%s4385_s3 + $0x228] sm:$0xff] }
 0x10d   : > { %1049 = vmatmul.mubr.f32.gmra.mxu1 %v3342_v51  ;;  %2406 = vmatpush3.msra.mxu0 %v916_v21  ;;  %v3440_v34 = vpop.f32.mrf.mxu0  ;;  %v701_v21 = vsel %vm636_vm3, 0.0, %v3454_v42  ;;  %v4413_v47 = vmov 0  ;;  %v755_v53 = vrot.slane %v3507_v12, 2 }
 0x10e   : > { %2035 = vmatprep.mubr.msk.f32.mxu1 %vm3316_vm14, %v3303_v33  ;;  %1189 = vmatmul.mubr.f32.gmra.mxu0 %v3432_v28  ;;  %v3555_v36 = vmax.f32 %v477_v15, 0.0  ;;  %v4414_v47 = vsel %vm3563_vm15, 4294967295, %v4413_v47  ;;  %v754_v52 = vrot.slane %v701_v21, 2  ;;  %v892_v21 = vld [vmem:[%s4385_s3 + $0x2a0] sm:$0xff] }
 0x10f   : > { %1193 = vmatprep.mubr.f32.mxu0 %v3423_v24  ;;  %2332 = vmatpush3.msra.mxu1 %v881_v25  ;;  %v3457_v43 = vpop.f32.mrf.mxu0  ;;  %v913_v25 = vld [vmem:[%s4385_s3 + $0x348] sm:$0xff]  ;;  %4415 = vst [vmem:[#allocation3_spill] sm:$0xff] %v4414_v47 }
 0x110   : > { %2333 = vmatprep.subr.mxu1 %v896_v30  ;;  %2407 = vmatprep.subr.mxu0 %v931_v35  ;;  %v3553_v35 = vmax.f32 %v482_v2, 0.0  ;;  %v3599_v2 = vsel %vm636_vm3, %v3539_v26, %v3542_v27  ;;  %v608_v15 = vsel %vm3572_vm0, %v3555_v36, 0.0 }
 0x111   : > { %2037 = vmatmul.mubr.msk.f32.gmra.mxu1 %vm3225_vm6, %v3371_v3  ;;  %2408 = vmatpush3.msra.mxu0 %v915_v37  ;;  %v3486_v60 = vpop.f32.mrf.mxu0  ;;  %v878_v37 = vld [vmem:[%s4385_s3 + $0x230] sm:$0xff] }
 0x112   : > { %2038 = vmatprep.mubr.msk.f32.mxu1 %vm3316_vm14, %v3312_v40  ;;  %1194 = vmatmul.mubr.f32.gmra.mxu0 %v3471_v49 }
 0x113   : > { %2062 = vmatprep.mubr.msk.f32.mxu0 %vm3225_vm6, %v3454_v42  ;;  %2334 = vmatpush3.msra.mxu1 %v880_v46  ;;  %v2604_v6 = vpop.f32.mrf.mxu0  ;;  %v543_v46 = vadd.s32 7, %v3197_v38 }
 0x114   : > { %2335 = vmatprep.subr.mxu1 %v895_v57  ;;  %2409 = vmatprep.subr.mxu0 %v930_v58  ;;  %v3545_v29 = vadd.f32 %v2604_v6, %v3202_v39  ;;  %v893_v57 = vld [vmem:[%s4385_s3 + $0x2a8] sm:$0xff]  ;;  %v928_v58 = vld [vmem:[%s4385_s3 + $0x3c0] sm:$0xff]  ;;  %v492_v6 = vadd.f32 %v3416_v22, %v3202_v39  ;;  %v487_v22 = vadd.f32 %v3202_v39, %v3440_v34  ;;  %v927_v34 = vld [vmem:[%s4385_s3 + $0x3b8] sm:$0xff] }
 0x115   : > { %1059 = vmatmul.mubr.f32.gmra.mxu1 %v3423_v24  ;;  %2410 = vmatpush3.msra.mxu0 %v914_v0  ;;  %v506_v16 = vpop.f32.mrf.mxu0  ;;  %v757_v0 = vrot.slane %v3534_v23, 2  ;;  %vm553_vm2 = vcmp.ge.s32.totalorder %v543_v46, 0  ;;  %vm563_vm4 = vcmp.lt.s32.totalorder %v543_v46, 16  ;;  %v609_v23 = vsel %vm3572_vm0, %v3553_v35, 0.0 }
 0x116   : > { %2039 = vmatprep.mubr.msk.f32.mxu1 %vm3391_vm1, %v3376_v5  ;;  %1199 = vmatmul.mubr.f32.gmra.mxu0 %v3519_v18  ;;  %4412 = vst [vmem:[#allocation2_spill] sm:$0xff] %v3545_v29  ;;  %v3548_v30 = vadd.f32 %v3202_v39, %v506_v16  ;;  %v4390_v61 = vmax.f32 %v3545_v29, 0.0  ;;  %v3623_v16 = vsel %vm733_vm10, %v754_v52, %v755_v53  ;;  %v3657_v29 = vmax.f32 %v492_v6, 0.0  ;;  %vm3669_vm8 = vmand %vm553_vm2, %vm563_vm4 }
 0x117   : > { %1203 = vmatprep.mubr.f32.mxu0 %v3507_v12  ;;  %2336 = vmatpush3.msra.mxu1 %v879_v14  ;;  %v760_v6 = vrot.slane %v3599_v2, 2 }
 0x118   : > { %2337 = vmatprep.subr.mxu1 %v894_v19  ;;  %2411 = vmatprep.subr.mxu0 %v929_v20  ;;  %v4391_v62 = vmax.f32 %v3548_v30, 0.0  ;;  %v615_v7 = vsel %vm3563_vm15, %v4390_v61, 0.0 }
 0x119   : > { %2041 = vmatmul.mubr.msk.f32.gmra.mxu1 %vm3225_vm6, %v3454_v42  ;;  %2412 = vmatpush3.msra.mxu0 %v913_v25  ;;  %v665_v19 = vrot.slane %v615_v7, 7  ;;  %v702_v25 = vsel %vm636_vm3, 0.0, %v3539_v26 }
 0x11a   : > { %2042 = vmatprep.mubr.msk.f32.mxu1 %vm3391_vm1, %v3387_v9  ;;  %1204 = vmatmul.mubr.f32.gmra.mxu0 %v3551_v32  ;;  %v614_v14 = vsel %vm3563_vm15, %v4391_v62, 0.0  ;;  %v3655_v62 = vsel %vm733_vm10, %v755_v53, %v757_v0  ;;  %v759_v0 = vrot.slane %v702_v25, 2  ;;  %v910_v25 = vld [vmem:[%s4385_s3 + $0x330] sm:$0xff]  ;;  %v1704_v53 = vld [vmem:[%s4387_s5 + $0x20] sm:$0xff] }
 0x11b   : > { %2064 = vmatprep.mubr.msk.f32.mxu0 %vm3225_vm6, %v3539_v26  ;;  %2338 = vmatpush3.msra.mxu1 %v878_v37  ;;  %v3619_v20 = vrot.slane %v614_v14, 7  ;;  %v911_v37 = vld [vmem:[%s4385_s3 + $0x338] sm:$0xff]  ;;  %v716_v52 = vsel %vm636_vm3, %v665_v19, 0.0 }
 0x11c   : > { %2339 = vmatprep.subr.mxu1 %v893_v57  ;;  %2413 = vmatprep.subr.mxu0 %v928_v58  ;;  %v804_v7 = vrot.slane %v716_v52, 2  ;;  %v3713_v52 = vsel %vm733_vm10, %v759_v0, %v760_v6 }
 0x11d   : > { %4418 = vst [vmem:[#allocation4_spill] sm:$0xff] %v3619_v20  ;;  %1069 = vmatmul.mubr.f32.gmra.mxu1 %v3507_v12  ;;  %2414 = vmatpush3.msra.mxu0 %v912_v1  ;;  %v3646_v57 = vsel %vm636_vm3, %v3619_v20, %v665_v19  ;;  %v706_v58 = vsel %vm636_vm3, 0.0, %v3619_v20  ;;  %v3650_v1 = vrot.slane %v608_v15, 7  ;;  %v3659_v19 = vmax.f32 %v487_v22, 0.0  ;;  %v876_v15 = vld [vmem:[%s4385_s3 + $0x220] sm:$0xff]  ;;  %v926_v22 = vld [vmem:[%s4385_s3 + $0x3b0] sm:$0xff] }
 0x11e   : > { %2043 = vmatprep.mubr.msk.f32.mxu1 %vm3475_vm5, %v3461_v45  ;;  %1209 = vmatmul.mubr.f32.gmra.mxu0 %v3623_v16  ;;  %4419 = vst [vmem:[#allocation5_spill] sm:$0xff] %v3646_v57  ;;  %v802_v14 = vrot.slane %v3646_v57, 2  ;;  %v801_v61 = vrot.slane %v706_v58, 2  ;;  %v656_v20 = vrot.slane %v609_v23, 7  ;;  %v712_v23 = vsel %vm636_vm3, %v3542_v27, 0.0 }
 0x11f   : > { %1213 = vmatprep.mubr.f32.mxu0 %v3599_v2  ;;  %2340 = vmatpush3.msra.mxu1 %v877_v4  ;;  %v891_v4 = vld [vmem:[%s4385_s3 + $0x298] sm:$0xff]  ;;  %v497_v27 = vadd.f32 %v3202_v39, %v3486_v60  ;;  %v762_v58 = vrot.slane %v712_v23, 2  ;;  %v925_v60 = vld [vmem:[%s4385_s3 + $0x3a8] sm:$0xff] }
 0x120   : > { %2341 = vmatprep.subr.mxu1 %v892_v21  ;;  %2415 = vmatprep.subr.mxu0 %v927_v34  ;;  %v3681_v21 = vsel %vm733_vm10, %v801_v61, %v802_v14  ;;  %v3684_v46 = vsel %vm733_vm10, %v802_v14, %v804_v7  ;;  %v544_v34 = vadd.s32 8, %v3197_v38  ;;  %v610_v61 = vsel %vm3669_vm8, %v3659_v19, 0.0  ;;  %v875_v38 = vld [vmem:[%s4385_s3 + $0x218] sm:$0xff]  ;;  %v890_v14 = vld [vmem:[%s4385_s3 + $0x290] sm:$0xff] }
 0x121   : > { %2045 = vmatmul.mubr.msk.f32.gmra.mxu1 %vm3225_vm6, %v3539_v26  ;;  %2416 = vmatpush3.msra.mxu0 %v911_v37  ;;  %4422 = vst [vmem:[#allocation6_spill] sm:$0xff] %v3681_v21  ;;  %4423 = vst [vmem:[#allocation7_spill] sm:$0xff] %v3684_v46  ;;  %v3704_v37 = vsel %vm636_vm3, %v3650_v1, %v656_v20  ;;  %v502_v7 = vadd.f32 %v3457_v43, %v3202_v39  ;;  %v703_v39 = vsel %vm636_vm3, 0.0, %v3650_v1  ;;  %v909_v43 = vld [vmem:[%s4385_s3 + $0x328] sm:$0xff]  ;;  %v888_v46 = vld [vmem:[%s4385_s3 + $0x280] sm:$0xff] }
 0x122   : > { %2046 = vmatprep.mubr.msk.f32.mxu1 %vm3475_vm5, %v3459_v44  ;;  %1214 = vmatmul.mubr.f32.gmra.mxu0 %v3655_v62  ;;  %vm554_vm9 = vcmp.ge.s32.totalorder %v544_v34, 0  ;;  %vm564_vm12 = vcmp.lt.s32.totalorder %v544_v34, 16  ;;  %v3735_v0 = vrot.slane %v610_v61, 7  ;;  %v713_v34 = vsel %vm636_vm3, %v656_v20, 0.0  ;;  %v873_v20 = vld [vmem:[%s4385_s3 + $0x208] sm:$0xff]  ;;  %v872_v21 = vld [vmem:[%s4385_s3 + $0x200] sm:$0xff] }
 0x123   : > { %2066 = vmatprep.mubr.msk.f32.mxu0 %vm3225_vm6, %v3650_v1  ;;  %2342 = vmatpush3.msra.mxu1 %v876_v15  ;;  %v611_v15 = vsel %vm3669_vm8, %v3657_v29, 0.0  ;;  %v3749_v61 = vmax.f32 %v502_v7, 0.0  ;;  %vm3752_vm13 = vmand %vm554_vm9, %vm564_vm12 }
 0x124   : > { %2343 = vmatprep.subr.mxu1 %v891_v4  ;;  %2417 = vmatprep.subr.mxu0 %v926_v22  ;;  %v3738_v4 = vmax.f32 %v497_v27, 0.0  ;;  %v874_v22 = vld [vmem:[%s4385_s3 + $0x210] sm:$0xff]  ;;  %v659_v23 = vrot.slane %v611_v15, 7  ;;  %v764_v27 = vrot.slane %v703_v39, 2  ;;  %v889_v15 = vld [vmem:[%s4385_s3 + $0x288] sm:$0xff] }
 0x125   : > { %1079 = vmatmul.mubr.f32.gmra.mxu1 %v3599_v2  ;;  %2418 = vmatpush3.msra.mxu0 %v910_v25  ;;  %v3747_v25 = vsel %vm733_vm10, %v760_v6, %v762_v58  ;;  %v924_v6 = vld [vmem:[%s4385_s3 + $0x3a0] sm:$0xff]  ;;  %v613_v39 = vsel %vm3752_vm13, %v3749_v61, 0.0 }
 0x126   : > { %2047 = vmatprep.mubr.msk.f32.mxu1 %vm3572_vm0, %v3555_v36  ;;  %1219 = vmatmul.mubr.f32.gmra.mxu0 %v3713_v52  ;;  %v908_v58 = vld [vmem:[%s4385_s3 + $0x320] sm:$0xff]  ;;  %v612_v7 = vsel %vm3752_vm13, %v3738_v4, 0.0 }
 0x127   : > { %1223 = vmatprep.mubr.f32.mxu0 %v3704_v37  ;;  %2344 = vmatpush3.msra.mxu1 %v875_v38  ;;  %v1701_v38 = vld [vmem:[%s4387_s5 + $0x8] sm:$0xff] }
 0x128   : > { %2345 = vmatprep.subr.mxu1 %v890_v14  ;;  %2419 = vmatprep.subr.mxu0 %v925_v60  ;;  %v765_v14 = vrot.slane %v3704_v37, 2  ;;  %v3779_v60 = vsel %vm636_vm3, %v3735_v0, %v659_v23  ;;  %v4432_v56 = vld [vmem:[#allocation6_spill] sm:$0xff] }
 0x129   : > { %2049 = vmatmul.mubr.msk.f32.gmra.mxu1 %vm3225_vm6, %v3650_v1  ;;  %2420 = vmatpush3.msra.mxu0 %v909_v43  ;;  %v770_v47 = vrot.slane %v3779_v60, 2 }
 0x12a   : > { %2050 = vmatprep.mubr.msk.f32.mxu1 %vm3572_vm0, %v3553_v35  ;;  %1224 = vmatmul.mubr.f32.gmra.mxu0 %v3747_v25  ;;  %v3789_v43 = vsel %vm733_vm10, %v764_v27, %v765_v14  ;;  %v704_v27 = vsel %vm636_vm3, 0.0, %v3735_v0 }
 0x12b   : > { %2068 = vmatprep.mubr.msk.f32.mxu0 %vm3225_vm6, %v3735_v0  ;;  %2346 = vmatpush3.msra.mxu1 %v874_v22  ;;  %v767_v22 = vrot.slane %v713_v34, 2  ;;  %v3806_v34 = vrot.slane %v612_v7, 7  ;;  %v769_v7 = vrot.slane %v704_v27, 2 }
 0x12c   : > { %2347 = vmatprep.subr.mxu1 %v889_v15  ;;  %2421 = vmatprep.subr.mxu0 %v924_v6  ;;  %v923_v15 = vld [vmem:[%s4385_s3 + $0x398] sm:$0xff] }
 0x12d   : > { %1089 = vmatmul.mubr.f32.gmra.mxu1 %v3704_v37  ;;  %2422 = vmatpush3.msra.mxu0 %v908_v58  ;;  %v907_v6 = vld [vmem:[%s4385_s3 + $0x318] sm:$0xff]  ;;  %v3809_v58 = vrot.slane %v613_v39, 7  ;;  %v3818_v57 = vsel %vm733_vm10, %v765_v14, %v767_v22  ;;  %v906_v14 = vld [vmem:[%s4385_s3 + $0x310] sm:$0xff]  ;;  %v714_v39 = vsel %vm636_vm3, %v659_v23, 0.0  ;;  %v3848_v23 = vsel %vm733_vm10, %v769_v7, %v770_v47 }
 0x12e   : > { %2051 = vmatprep.mubr.msk.f32.mxu1 %vm3669_vm8, %v3659_v19  ;;  %1229 = vmatmul.mubr.f32.gmra.mxu0 %v3789_v43  ;;  %v772_v27 = vrot.slane %v714_v39, 2 }
 0x12f   : > { %1233 = vmatprep.mubr.f32.mxu0 %v3779_v60  ;;  %2348 = vmatpush3.msra.mxu1 %v873_v20  ;;  %v951_v20 = vld [vmem:[%s4385_s3 + $0x478] sm:$0xff]  ;;  %v3841_v22 = vsel %vm636_vm3, %v3806_v34, %v3809_v58 }
 0x130   : > { %2349 = vmatprep.subr.mxu1 %v888_v46  ;;  %2423 = vmatprep.subr.mxu0 %v923_v15  ;;  %v922_v46 = vld [vmem:[%s4385_s3 + $0x390] sm:$0xff]  ;;  %v921_v15 = vld [vmem:[%s4385_s3 + $0x388] sm:$0xff]  ;;  %v3863_v7 = vsel %vm733_vm10, %v770_v47, %v772_v27  ;;  %v793_v11 = vrot.slane %v3841_v22, 2  ;;  %v1712_v47 = vld [vmem:[%s4387_s5 + $0x60] sm:$0xff] }
 0x131   : > { %2053 = vmatmul.mubr.msk.f32.gmra.mxu1 %vm3225_vm6, %v3735_v0  ;;  %2424 = vmatpush3.msra.mxu0 %v907_v6  ;;  %v920_v6 = vld [vmem:[%s4385_s3 + $0x380] sm:$0xff] }
 0x132   : > { %2054 = vmatprep.mubr.msk.f32.mxu1 %vm3669_vm8, %v3657_v29  ;;  %1234 = vmatmul.mubr.f32.gmra.mxu0 %v3818_v57 }
 0x133   : > { %2070 = vmatprep.mubr.msk.f32.mxu0 %vm3225_vm6, %v3806_v34  ;;  %2350 = vmatpush3.msra.mxu1 %v872_v21  ;;  %v905_v21 = vld [vmem:[%s4385_s3 + $0x308] sm:$0xff] }
 0x134   : > { %2425 = vmatprep.subr.mxu0 %v922_v46  ;;  %2605 = vmatprep.subr.mxu1 %v951_v20  ;;  %v904_v46 = vld [vmem:[%s4385_s3 + $0x300] sm:$0xff] }
 0x135   : > { %1099 = vmatmul.mubr.f32.gmra.mxu1 %v3779_v60  ;;  %2426 = vmatpush3.msra.mxu0 %v906_v14 }
 0x136   : > { %1239 = vmatmul.mubr.f32.gmra.mxu0 %v3848_v23  ;;  %1313 = vmatprep.mubr.f32.mxu1 %v3350_v55  ;;  %v950_v55 = vld [vmem:[%s4385_s3 + $0x470] sm:$0xff] }
 0x137   : > { %1243 = vmatprep.mubr.f32.mxu0 %v3841_v22  ;;  %2427 = vmatprep.subr.mxu0 %v921_v15 }
 0x138   : > { %2428 = vmatpush3.msra.mxu0 %v905_v21 }
 0x139   : > { %2071 = vmatmul.mubr.msk.f32.vlgmr.msra.gmra.mxu1 %vm3229_vm7, %v3239_v63  ;;  %2429 = vmatprep.subr.mxu0 %v920_v6  ;;  %v949_v63 = vld [vmem:[%s4385_s3 + $0x468] sm:$0xff] }
 0x13a   : > { %2606 = vmatpush3.msra.mxu1 %v951_v20  ;;  %1244 = vmatmul.mubr.f32.gmra.mxu0 %v3863_v7 }
 0x13b   : > { %1318 = vmatprep.mubr.f32.mxu1 %v3385_v8  ;;  %2087 = vmatprep.mubr.msk.f32.mxu0 %vm3263_vm11, %v3268_v17  ;;  %v948_v8 = vld [vmem:[%s4385_s3 + $0x460] sm:$0xff] }
 0x13c   : > { %2607 = vmatprep.subr.mxu1 %v950_v55  ;;  %2430 = vmatpush3.msra.mxu0 %v904_v46 }
 0x13d   : > { %2072 = vmatmul.mubr.msk.f32.gmra.mxu1 %vm3229_vm7, %v3219_v54  ;;  %v947_v54 = vld [vmem:[%s4385_s3 + $0x458] sm:$0xff] }
 0x13e   : > { %2608 = vmatpush3.msra.mxu1 %v950_v55  ;;  %1323 = vmatprep.mubr.f32.mxu1 %v3432_v28 }
 0x13f   : > { %2089 = vmatmul.mubr.msk.f32.vlgmr.msra.gmra.mxu0 %vm3225_vm6, %v3300_v31  ;;  %2609 = vmatprep.subr.mxu1 %v949_v63  ;;  %v944_v31 = vld [vmem:[%s4385_s3 + $0x440] sm:$0xff] }
 0x140   : > { %2090 = vmatprep.mubr.msk.f32.mxu0 %vm3263_vm11, %v3258_v10  ;;  %2610 = vmatpush3.msra.mxu1 %v949_v63 }
 0x141   : > { %2073 = vmatmul.mubr.msk.f32.gmra.mxu1 %vm3263_vm11, %v3268_v17  ;;  %2611 = vmatprep.subr.mxu1 %v948_v8  ;;  %v945_v17 = vld [vmem:[%s4385_s3 + $0x448] sm:$0xff] }
 0x142   : > { %1328 = vmatprep.mubr.f32.mxu1 %v3471_v49  ;;  %2612 = vmatpush3.msra.mxu1 %v948_v8 }
 0x143   : > { %1464 = vmatmul.mubr.f32.gmra.mxu0 %v3342_v51  ;;  %2613 = vmatprep.subr.mxu1 %v947_v54  ;;  %v940_v51 = vld [vmem:[%s4385_s3 + $0x420] sm:$0xff] }
 0x144   : > { %2091 = vmatprep.mubr.msk.f32.mxu0 %vm3316_vm14, %v3303_v33  ;;  %2614 = vmatpush3.msra.mxu1 %v947_v54 }
 0x145   : > { %2074 = vmatmul.mubr.msk.f32.gmra.mxu1 %vm3263_vm11, %v3258_v10  ;;  %2615 = vmatprep.subr.mxu1 %v946_v59  ;;  %v943_v10 = vld [vmem:[%s4385_s3 + $0x438] sm:$0xff] }
 0x146   : > { %1333 = vmatprep.mubr.f32.mxu1 %v3519_v18  ;;  %2616 = vmatpush3.msra.mxu1 %v946_v59 }
 0x147   : > { %2093 = vmatmul.mubr.msk.f32.gmra.mxu0 %vm3225_vm6, %v3371_v3  ;;  %2617 = vmatprep.subr.mxu1 %v945_v17  ;;  %v937_v3 = vld [vmem:[%s4385_s3 + $0x408] sm:$0xff] }
 0x148   : > { %2094 = vmatprep.mubr.msk.f32.mxu0 %vm3316_vm14, %v3312_v40  ;;  %2618 = vmatpush3.msra.mxu1 %v945_v17 }
 0x149   : > { %2075 = vmatmul.mubr.msk.f32.gmra.mxu1 %vm3316_vm14, %v3303_v33  ;;  %2619 = vmatprep.subr.mxu1 %v944_v31  ;;  %v941_v33 = vld [vmem:[%s4385_s3 + $0x428] sm:$0xff] }
 0x14a   : > { %1338 = vmatprep.mubr.f32.mxu1 %v3551_v32  ;;  %2620 = vmatpush3.msra.mxu1 %v944_v31 }
 0x14b   : > { %1474 = vmatmul.mubr.f32.gmra.mxu0 %v3423_v24  ;;  %2621 = vmatprep.subr.mxu1 %v943_v10 }
 0x14c   : > { %2095 = vmatprep.mubr.msk.f32.mxu0 %vm3391_vm1, %v3376_v5  ;;  %2622 = vmatpush3.msra.mxu1 %v943_v10 }
 0x14d   : > { %2076 = vmatmul.mubr.msk.f32.gmra.mxu1 %vm3316_vm14, %v3312_v40  ;;  %2623 = vmatprep.subr.mxu1 %v942_v13  ;;  %v939_v40 = vld [vmem:[%s4385_s3 + $0x418] sm:$0xff] }
 0x14e   : > { %1343 = vmatprep.mubr.f32.mxu1 %v3623_v16  ;;  %2624 = vmatpush3.msra.mxu1 %v942_v13 }
 0x14f   : > { %2097 = vmatmul.mubr.msk.f32.gmra.mxu0 %vm3225_vm6, %v3454_v42  ;;  %2625 = vmatprep.subr.mxu1 %v941_v33  ;;  %v715_v42 = vsel %vm636_vm3, %v3809_v58, 0.0  ;;  %v1700_v58 = vld [vmem:[%s4387_s5] sm:$0xff] }
 0x150   : > { %2098 = vmatprep.mubr.msk.f32.mxu0 %vm3391_vm1, %v3387_v9  ;;  %2626 = vmatpush3.msra.mxu1 %v941_v33 }
 0x151   : > { %2077 = vmatmul.mubr.msk.f32.gmra.mxu1 %vm3391_vm1, %v3376_v5  ;;  %2627 = vmatprep.subr.mxu1 %v940_v51  ;;  %v936_v5 = vld [vmem:[%s4385_s3 + $0x400] sm:$0xff] }
 0x152   : > { %1348 = vmatprep.mubr.f32.mxu1 %v3655_v62  ;;  %2628 = vmatpush3.msra.mxu1 %v940_v51 }
 0x153   : > { %1484 = vmatmul.mubr.f32.gmra.mxu0 %v3507_v12  ;;  %2629 = vmatprep.subr.mxu1 %v939_v40  ;;  %v4426_v12 = vmax.f32 %v3548_v30, 0.0  ;;  %v4431_v30 = vld [vmem:[#allocation5_spill] sm:$0xff] }
 0x154   : > { %2099 = vmatprep.mubr.msk.f32.mxu0 %vm3475_vm5, %v3461_v45  ;;  %2630 = vmatpush3.msra.mxu1 %v939_v40 }
 0x155   : > { %2078 = vmatmul.mubr.msk.f32.gmra.mxu1 %vm3391_vm1, %v3387_v9  ;;  %2631 = vmatprep.subr.mxu1 %v938_v41  ;;  %v705_v9 = vsel %vm636_vm3, 0.0, %v3806_v34 }
 0x156   : > { %1353 = vmatprep.mubr.f32.mxu1 %v3713_v52  ;;  %2632 = vmatpush3.msra.mxu1 %v938_v41  ;;  %v792_v24 = vrot.slane %v705_v9, 2 }
 0x157   : > { %2101 = vmatmul.mubr.msk.f32.gmra.mxu0 %vm3225_vm6, %v3539_v26  ;;  %2633 = vmatprep.subr.mxu1 %v937_v3 }
 0x158   : > { %2102 = vmatprep.mubr.msk.f32.mxu0 %vm3475_vm5, %v3459_v44  ;;  %2634 = vmatpush3.msra.mxu1 %v937_v3 }
 0x159   : > { %2079 = vmatmul.mubr.msk.f32.gmra.mxu1 %vm3475_vm5, %v3461_v45  ;;  %2635 = vmatprep.subr.mxu1 %v936_v5  ;;  %v795_v45 = vrot.slane %v715_v42, 2 }
 0x15a   : > { %1358 = vmatprep.mubr.f32.mxu1 %v3747_v25  ;;  %2636 = vmatpush3.msra.mxu1 %v936_v5 }
 0x15b   : > { %1494 = vmatmul.mubr.f32.gmra.mxu0 %v3599_v2  ;;  %v796_v50 = vsel %vm733_vm10, %v793_v11, %v795_v45  ;;  %v1709_v2 = vld [vmem:[%s4387_s5 + $0x48] sm:$0xff] }
 0x15c   : > { %2103 = vmatprep.mubr.msk.f32.mxu0 %vm3572_vm0, %v3555_v36 }
 0x15d   : > { %2080 = vmatmul.mubr.msk.f32.gmra.mxu1 %vm3475_vm5, %v3459_v44  ;;  %v794_v44 = vsel %vm733_vm10, %v792_v24, %v793_v11 }
 0x15e   : > { %1363 = vmatprep.mubr.f32.mxu1 %v3789_v43 }
 0x15f   : > { %2105 = vmatmul.mubr.msk.f32.gmra.mxu0 %vm3225_vm6, %v3650_v1  ;;  %v1706_v1 = vld [vmem:[%s4387_s5 + $0x30] sm:$0xff] }
 0x160   : > { %2106 = vmatprep.mubr.msk.f32.mxu0 %vm3572_vm0, %v3553_v35 }
 0x161   : > { %2081 = vmatmul.mubr.msk.f32.gmra.mxu1 %vm3572_vm0, %v3555_v36 }
 0x162   : > { %1368 = vmatprep.mubr.f32.mxu1 %v3818_v57 }
 0x163   : > { %1504 = vmatmul.mubr.f32.gmra.mxu0 %v3704_v37 }
 0x164   : > { %2107 = vmatprep.mubr.msk.f32.mxu0 %vm3669_vm8, %v3659_v19 }
 0x165   : > { %2082 = vmatmul.mubr.msk.f32.gmra.mxu1 %vm3572_vm0, %v3553_v35  ;;  %v4429_v35 = vld [vmem:[#allocation2_spill] sm:$0xff] }
 0x166   : > { %1373 = vmatprep.mubr.f32.mxu1 %v3848_v23  ;;  %v4430_v36 = vmax.f32 %v4429_v35, 0.0 }
 0x167   : > { %2109 = vmatmul.mubr.msk.f32.gmra.mxu0 %vm3225_vm6, %v3735_v0 }
 0x168   : > { %2110 = vmatprep.mubr.msk.f32.mxu0 %vm3669_vm8, %v3657_v29 }
 0x169   : > { %2083 = vmatmul.mubr.msk.f32.gmra.mxu1 %vm3669_vm8, %v3659_v19  ;;  %v1705_v19 = vld [vmem:[%s4387_s5 + $0x28] sm:$0xff] }
 0x16a   : > { %1378 = vmatprep.mubr.f32.mxu1 %v3863_v7 }
 0x16b   : > { %1514 = vmatmul.mubr.f32.gmra.mxu0 %v3779_v60  ;;  %v4123_v60 = vld [vmem:[%s4386_s4] ss:$0 sm:$0xff] }
 0x16c   : > { %2111 = vmatprep.mubr.msk.f32.mxu0 %vm3752_vm13, %v3738_v4  ;;  %4434 = vst [vmem:[#allocation3_spill] sm:$0xff] %v4123_v60 }
 0x16d   : > { %2084 = vmatmul.mubr.msk.f32.gmra.mxu1 %vm3669_vm8, %v3657_v29  ;;  %v4428_v29 = vld [vmem:[#allocation4_spill] sm:$0xff] }
 0x16e   : > { %1383 = vmatprep.mubr.f32.mxu1 %v794_v44 }
 0x16f   : > { %2113 = vmatmul.mubr.msk.f32.gmra.mxu0 %vm3225_vm6, %v3806_v34 }
 0x170   : > { %2114 = vmatprep.mubr.msk.f32.mxu0 %vm3752_vm13, %v3749_v61 }
 0x171   : > { %2085 = vmatmul.mubr.msk.f32.gmra.mxu1 %vm3752_vm13, %v3738_v4  ;;  %v1702_v4 = vld [vmem:[%s4387_s5 + $0x10] sm:$0xff] }
 0x172   : > { %1388 = vmatprep.mubr.f32.mxu1 %v796_v50 }
 0x173   : > { %1524 = vmatmul.mubr.f32.gmra.mxu0 %v3841_v22 }
 0x174   : > { %2115 = vmatprep.mubr.msk.f32.mxu0 %vm3563_vm15, %v4426_v12 }
 0x175   : > { %2086 = vmatmul.mubr.msk.f32.gmra.mxu1 %vm3752_vm13, %v3749_v61 }
 0x176   : > { %2637 = vmatprep.mubr.f32.mxu1 %v3432_v28  ;;  %v4433_v28 = vld [vmem:[#allocation7_spill] sm:$0xff] }
 0x177   : > { %2117 = vmatmul.mubr.msk.f32.gmra.mxu0 %vm3225_vm6, %v4428_v29 }
 0x178   : > { %2118 = vmatprep.mubr.msk.f32.mxu0 %vm3563_vm15, %v4430_v36 }
 0x179   : > { %2638 = vmatmul.mubr.f32.vlgmr.msra.gmra.mxu1 %v3471_v49  ;;  %v1715_v49 = vld [vmem:[%s4387_s5 + $0x78] sm:$0xff] }
 0x17a   : > { %2640 = vmatprep.mubr.f32.mxu1 %v3519_v18  ;;  %2661 = vmatprep.subr.mxu0 %v1715_v49  ;;  %v1714_v18 = vld [vmem:[%s4387_s5 + $0x70] sm:$0xff] }
 0x17b   : > { %1534 = vmatmul.mubr.f32.gmra.mxu0 %v4431_v30  ;;  %2717 = vmatprep.subr.mxu1 %v1715_v49 }
 0x17c   : > { %2662 = vmatpush3.msra.mxu0 %v1715_v49  ;;  %2733 = vmatpush3.msra.mxu1 %v1715_v49 }
 0x17d   : > { %2641 = vmatmul.mubr.f32.gmra.mxu1 %v3551_v32  ;;  %2663 = vmatprep.subr.mxu0 %v1714_v18  ;;  %v1713_v32 = vld [vmem:[%s4387_s5 + $0x68] sm:$0xff] }
 0x17e   : > { %2643 = vmatprep.mubr.f32.mxu1 %v3623_v16  ;;  %2718 = vmatprep.subr.mxu1 %v1714_v18  ;;  %v1708_v16 = vld [vmem:[%s4387_s5 + $0x40] sm:$0xff] }
 0x17f   : > { %2664 = vmatpush3.msra.mxu0 %v1714_v18  ;;  %2734 = vmatpush3.msra.mxu1 %v1714_v18 }
 0x180   : > { %2665 = vmatprep.subr.mxu0 %v1713_v32  ;;  %2719 = vmatprep.subr.mxu1 %v1713_v32 }
 0x181   : > { %2644 = vmatmul.mubr.f32.gmra.mxu1 %v3655_v62  ;;  %2666 = vmatpush3.msra.mxu0 %v1713_v32  ;;  %v1710_v62 = vld [vmem:[%s4387_s5 + $0x50] sm:$0xff] }
 0x182   : > { %2646 = vmatprep.mubr.f32.mxu1 %v3713_v52  ;;  %2735 = vmatpush3.msra.mxu1 %v1713_v32  ;;  %v1703_v52 = vld [vmem:[%s4387_s5 + $0x18] sm:$0xff] }
 0x183   : > { %2667 = vmatprep.subr.mxu0 %v1712_v47  ;;  %2720 = vmatprep.subr.mxu1 %v1712_v47 }
 0x184   : > { %2668 = vmatpush3.msra.mxu0 %v1712_v47  ;;  %2736 = vmatpush3.msra.mxu1 %v1712_v47 }
 0x185   : > { %2647 = vmatmul.mubr.f32.gmra.mxu1 %v3747_v25  ;;  %2669 = vmatprep.subr.mxu0 %v1711_v48 }
 0x186   : > { %2649 = vmatprep.mubr.f32.mxu1 %v3789_v43  ;;  %2721 = vmatprep.subr.mxu1 %v1711_v48 }
 0x187   : > { %2670 = vmatpush3.msra.mxu0 %v1711_v48  ;;  %2737 = vmatpush3.msra.mxu1 %v1711_v48 }
 0x188   : > { %2671 = vmatprep.subr.mxu0 %v1710_v62  ;;  %2722 = vmatprep.subr.mxu1 %v1710_v62 }
 0x189   : > { %2650 = vmatmul.mubr.f32.gmra.mxu1 %v3818_v57  ;;  %2672 = vmatpush3.msra.mxu0 %v1710_v62  ;;  %v1707_v57 = vld [vmem:[%s4387_s5 + $0x38] sm:$0xff] }
 0x18a   : > { %2652 = vmatprep.mubr.f32.mxu1 %v3848_v23  ;;  %2738 = vmatpush3.msra.mxu1 %v1710_v62 }
 0x18b   : > { %2673 = vmatprep.subr.mxu0 %v1709_v2  ;;  %2723 = vmatprep.subr.mxu1 %v1709_v2 }
 0x18c   : > { %2674 = vmatpush3.msra.mxu0 %v1709_v2  ;;  %2739 = vmatpush3.msra.mxu1 %v1709_v2 }
 0x18d   : > { %2653 = vmatmul.mubr.f32.gmra.mxu1 %v3863_v7  ;;  %2675 = vmatprep.subr.mxu0 %v1708_v16 }
 0x18e   : > { %2655 = vmatprep.mubr.f32.mxu1 %v794_v44  ;;  %2724 = vmatprep.subr.mxu1 %v1708_v16 }
 0x18f   : > { %2676 = vmatpush3.msra.mxu0 %v1708_v16  ;;  %2740 = vmatpush3.msra.mxu1 %v1708_v16 }
 0x190   : > { %2677 = vmatprep.subr.mxu0 %v1707_v57  ;;  %2725 = vmatprep.subr.mxu1 %v1707_v57 }
 0x191   : > { %2656 = vmatmul.mubr.f32.gmra.mxu1 %v796_v50  ;;  %2678 = vmatpush3.msra.mxu0 %v1707_v57 }
 0x192   : > { %2658 = vmatprep.mubr.f32.mxu1 %v4432_v56  ;;  %2741 = vmatpush3.msra.mxu1 %v1707_v57 }
 0x193   : > { %2679 = vmatprep.subr.mxu0 %v1706_v1  ;;  %2726 = vmatprep.subr.mxu1 %v1706_v1 }
 0x194   : > { %2680 = vmatpush3.msra.mxu0 %v1706_v1  ;;  %2742 = vmatpush3.msra.mxu1 %v1706_v1 }
 0x195   : > { %2659 = vmatmul.mubr.f32.gmra.mxu1 %v4433_v28  ;;  %2681 = vmatprep.subr.mxu0 %v1705_v19 }
 0x196   : > { %2727 = vmatprep.subr.mxu1 %v1705_v19  ;;  %2682 = vmatpush3.msra.mxu0 %v1705_v19 }
 0x197   : > { %2743 = vmatpush3.msra.mxu1 %v1705_v19  ;;  %2683 = vmatprep.subr.mxu0 %v1704_v53 }
 0x198   : > { %2728 = vmatprep.subr.mxu1 %v1704_v53  ;;  %2684 = vmatpush3.msra.mxu0 %v1704_v53 }
 0x199   : > { %2744 = vmatpush3.msra.mxu1 %v1704_v53  ;;  %2685 = vmatprep.subr.mxu0 %v1703_v52 }
 0x19a   : > { %2729 = vmatprep.subr.mxu1 %v1703_v52  ;;  %2686 = vmatpush3.msra.mxu0 %v1703_v52 }
 0x19b   : > { %2745 = vmatpush3.msra.mxu1 %v1703_v52  ;;  %2687 = vmatprep.subr.mxu0 %v1702_v4 }
 0x19c   : > { %2730 = vmatprep.subr.mxu1 %v1702_v4  ;;  %2688 = vmatpush3.msra.mxu0 %v1702_v4 }
 0x19d   : > { %2746 = vmatpush3.msra.mxu1 %v1702_v4  ;;  %2689 = vmatprep.subr.mxu0 %v1701_v38 }
 0x19e   : > { %2731 = vmatprep.subr.mxu1 %v1701_v38  ;;  %2690 = vmatpush3.msra.mxu0 %v1701_v38 }
 0x19f   : > { %2747 = vmatpush3.msra.mxu1 %v1701_v38  ;;  %2691 = vmatprep.subr.mxu0 %v1700_v58 }
 0x1a0   : > { %2732 = vmatprep.subr.mxu1 %v1700_v58  ;;  %2692 = vmatpush3.msra.mxu0 %v1700_v58 }
 0x1a1   : > { %2748 = vmatpush3.msra.mxu1 %v1700_v58 }
 0x1b9   : > { %v2191_v37 = vpop.f32.mrf.mxu1 }
 0x1bb   : > { %v2192_v0 = vpop.f32.mrf.mxu1 }
 0x1bc   : > { %v2193_v25 = vadd.f32 %v2192_v0, %v2191_v37 }
 0x1bd   : > { %v2194_v61 = vpop.f32.mrf.mxu1 }
 0x1be   : > { %v2271_v43 = vpop.f32.mrf.mxu0  ;;  %v1026_v39 = vadd.f32 %v2193_v25, %v4123_v60 }
 0x1bf   : > { %v2195_v34 = vpop.f32.mrf.mxu1 }
 0x1c0   : > { %v2196_v20 = vadd.f32 %v2195_v34, %v2194_v61  ;;  %v2272_v14 = vpop.f32.mrf.mxu0 }
 0x1c1   : > { %v2273_v22 = vadd.f32 %v2272_v14, %v2271_v43  ;;  %v2197_v15 = vpop.f32.mrf.mxu1 }
 0x1c2   : > { %v2274_v23 = vpop.f32.mrf.mxu0  ;;  %v1031_v55 = vadd.f32 %v2196_v20, %v4123_v60 }
 0x1c3   : > { %v4129_v27 = vadd.f32 %v2273_v22, %v1026_v39  ;;  %v2198_v21 = vpop.f32.mrf.mxu1 }
 0x1c4   : > { %v2199_v6 = vadd.f32 %v2198_v21, %v2197_v15  ;;  %v2275_v7 = vpop.f32.mrf.mxu0 }
 0x1c5   : > { %v2276_v46 = vadd.f32 %v2275_v7, %v2274_v23  ;;  %v2200_v63 = vpop.f32.mrf.mxu1 }
 0x1c6   : > { %v2277_v8 = vpop.f32.mrf.mxu0  ;;  %v1036_v10 = vadd.f32 %v2199_v6, %v4123_v60 }
 0x1c7   : > { %v4132_v54 = vadd.f32 %v2276_v46, %v1031_v55  ;;  %v2201_v59 = vpop.f32.mrf.mxu1 }
 0x1c8   : > { %v2202_v17 = vadd.f32 %v2201_v59, %v2200_v63  ;;  %v2278_v31 = vpop.f32.mrf.mxu0 }
 0x1c9   : > { %v2279_v13 = vadd.f32 %v2278_v31, %v2277_v8  ;;  %v2203_v33 = vpop.f32.mrf.mxu1 }
 0x1ca   : > { %v2280_v51 = vpop.f32.mrf.mxu0  ;;  %v1041_v9 = vadd.f32 %v2202_v17, %v4123_v60 }
 0x1cb   : > { %v4135_v40 = vadd.f32 %v2279_v13, %v1036_v10  ;;  %v2204_v41 = vpop.f32.mrf.mxu1 }
 0x1cc   : > { %v2205_v3 = vadd.f32 %v2204_v41, %v2203_v33  ;;  %v2281_v5 = vpop.f32.mrf.mxu0 }
 0x1cd   : > { %v2282_v11 = vadd.f32 %v2281_v5, %v2280_v51  ;;  %v2206_v24 = vpop.f32.mrf.mxu1 }
 0x1ce   : > { %v2283_v42 = vpop.f32.mrf.mxu0  ;;  %v1046_v26 = vadd.f32 %v2205_v3, %v4123_v60 }
 0x1cf   : > { %v4138_v44 = vadd.f32 %v2282_v11, %v1041_v9  ;;  %v2207_v45 = vpop.f32.mrf.mxu1 }
 0x1d0   : > { %v2208_v50 = vadd.f32 %v2207_v45, %v2206_v24  ;;  %v2284_v12 = vpop.f32.mrf.mxu0 }
 0x1d1   : > { %v2285_v29 = vadd.f32 %v2284_v12, %v2283_v42  ;;  %v2209_v35 = vpop.f32.mrf.mxu1 }
 0x1d2   : > { %v2286_v36 = vpop.f32.mrf.mxu0  ;;  %v1051_v18 = vadd.f32 %v2208_v50, %v4123_v60 }
 0x1d3   : > { %v4141_v30 = vadd.f32 %v2285_v29, %v1046_v26  ;;  %v2210_v56 = vpop.f32.mrf.mxu1 }
 0x1d4   : > { %v2211_v28 = vadd.f32 %v2210_v56, %v2209_v35  ;;  %v2287_v49 = vpop.f32.mrf.mxu0 }
 0x1d5   : > { %v2288_v32 = vadd.f32 %v2287_v49, %v2286_v36  ;;  %v2212_v47 = vpop.f32.mrf.mxu1 }
 0x1d6   : > { %v2289_v48 = vpop.f32.mrf.mxu0  ;;  %v1056_v1 = vadd.f32 %v2211_v28, %v4123_v60 }
 0x1d7   : > { %v4144_v62 = vadd.f32 %v2288_v32, %v1051_v18  ;;  %v2213_v2 = vpop.f32.mrf.mxu1 }
 0x1d8   : > { %v2214_v16 = vadd.f32 %v2213_v2, %v2212_v47  ;;  %v2290_v57 = vpop.f32.mrf.mxu0 }
 0x1d9   : > { %v2291_v19 = vadd.f32 %v2290_v57, %v2289_v48  ;;  %v2215_v53 = vpop.f32.mrf.mxu1 }
 0x1da   : > { %v2292_v37 = vpop.f32.mrf.mxu0  ;;  %v1061_v61 = vadd.f32 %v2214_v16, %v4123_v60 }
 0x1db   : > { %v4147_v52 = vadd.f32 %v2291_v19, %v1056_v1  ;;  %v2216_v0 = vpop.f32.mrf.mxu1 }
 0x1dc   : > { %v2217_v4 = vadd.f32 %v2216_v0, %v2215_v53  ;;  %v2293_v25 = vpop.f32.mrf.mxu0 }
 0x1dd   : > { %v2294_v38 = vadd.f32 %v2293_v25, %v2292_v37  ;;  %v2218_v43 = vpop.f32.mrf.mxu1 }
 0x1de   : > { %v2295_v34 = vpop.f32.mrf.mxu0  ;;  %v1066_v22 = vadd.f32 %v2217_v4, %v4123_v60 }
 0x1df   : > { %v4150_v58 = vadd.f32 %v2294_v38, %v1061_v61  ;;  %v2219_v20 = vpop.f32.mrf.mxu1 }
 0x1e0   : > { %v2220_v14 = vadd.f32 %v2219_v20, %v2218_v43  ;;  %v2296_v39 = vpop.f32.mrf.mxu0 }
 0x1e1   : > { %v2297_v15 = vadd.f32 %v2296_v39, %v2295_v34  ;;  %v2221_v23 = vpop.f32.mrf.mxu1 }
 0x1e2   : > { %v2298_v21 = vpop.f32.mrf.mxu0  ;;  %v1071_v63 = vadd.f32 %v2220_v14, %v4123_v60 }
 0x1e3   : > { %v4153_v6 = vadd.f32 %v2297_v15, %v1066_v22  ;;  %v2222_v7 = vpop.f32.mrf.mxu1 }
 0x1e4   : > { %v2223_v55 = vadd.f32 %v2222_v7, %v2221_v23  ;;  %v2299_v46 = vpop.f32.mrf.mxu0 }
 0x1e5   : > { %4435 = vst [vmem:[#allocation4_spill] sm:$0xff] %v4153_v6  ;;  %v2300_v8 = vadd.f32 %v2299_v46, %v2298_v21  ;;  %v2224_v59 = vpop.f32.mrf.mxu1 }
 0x1e6   : > { %v2301_v17 = vpop.f32.mrf.mxu0  ;;  %v1076_v51 = vadd.f32 %v2223_v55, %v4123_v60 }
 0x1e7   : > { %v4156_v31 = vadd.f32 %v2300_v8, %v1071_v63  ;;  %v2225_v10 = vpop.f32.mrf.mxu1 }
 0x1e8   : > { %v2226_v13 = vadd.f32 %v2225_v10, %v2224_v59  ;;  %v2302_v33 = vpop.f32.mrf.mxu0 }
 0x1e9   : > { %v2303_v41 = vadd.f32 %v2302_v33, %v2301_v17  ;;  %v2227_v3 = vpop.f32.mrf.mxu1 }
 0x1ea   : > { %v2304_v5 = vpop.f32.mrf.mxu0  ;;  %v1081_v45 = vadd.f32 %v2226_v13, %v4123_v60 }
 0x1eb   : > { %v4159_v9 = vadd.f32 %v2303_v41, %v1076_v51  ;;  %v2228_v11 = vpop.f32.mrf.mxu1 }
 0x1ec   : > { %v2229_v24 = vadd.f32 %v2228_v11, %v2227_v3  ;;  %v2305_v42 = vpop.f32.mrf.mxu0 }
 0x1ed   : > { %4436 = vst [vmem:[#allocation2_spill] sm:$0xff] %v4159_v9  ;;  %v2306_v50 = vadd.f32 %v2305_v42, %v2304_v5  ;;  %v2230_v12 = vpop.f32.mrf.mxu1 }
 0x1ee   : > { %v2307_v26 = vpop.f32.mrf.mxu0  ;;  %v1086_v28 = vadd.f32 %v2229_v24, %v4123_v60 }
 0x1ef   : > { %v4162_v29 = vadd.f32 %v2306_v50, %v1081_v45  ;;  %v2231_v35 = vpop.f32.mrf.mxu1 }
 0x1f0   : > { %v2232_v36 = vadd.f32 %v2231_v35, %v2230_v12  ;;  %v2308_v56 = vpop.f32.mrf.mxu0 }
 0x1f1   : > { %4437 = vst [vmem:[#allocation5_spill] sm:$0xff] %v4162_v29  ;;  %v2309_v49 = vadd.f32 %v2308_v56, %v2307_v26  ;;  %v2233_v18 = vpop.f32.mrf.mxu1 }
 0x1f2   : > { %v2310_v32 = vpop.f32.mrf.mxu0  ;;  %v1091_v57 = vadd.f32 %v2232_v36, %v4123_v60 }
 0x1f3   : > { %v4165_v47 = vadd.f32 %v2309_v49, %v1086_v28  ;;  %v2234_v48 = vpop.f32.mrf.mxu1 }
 0x1f4   : > { %v2235_v2 = vadd.f32 %v2234_v48, %v2233_v18  ;;  %v2311_v16 = vpop.f32.mrf.mxu0 }
 0x1f5   : > { %4438 = vst [vmem:[#allocation6_spill] sm:$0xff] %v4165_v47  ;;  %v2312_v1 = vadd.f32 %v2311_v16, %v2310_v32  ;;  %v2236_v19 = vpop.f32.mrf.mxu1 }
 0x1f6   : > { %v2313_v53 = vpop.f32.mrf.mxu0  ;;  %v1096_v61 = vadd.f32 %v2235_v2, %v4123_v60 }
 0x1f7   : > { %v4168_v37 = vadd.f32 %v2312_v1, %v1091_v57  ;;  %v2237_v0 = vpop.f32.mrf.mxu1 }
 0x1f8   : > { %v4170_v4 = vadd.f32 %v2237_v0, %v2236_v19  ;;  %v2314_v25 = vpop.f32.mrf.mxu0 }
 0x1f9   : > { %4439 = vst [vmem:[#allocation7_spill] sm:$0xff] %v4168_v37  ;;  %v2315_v38 = vadd.f32 %v2314_v25, %v2313_v53  ;;  %v2351_v43 = vpop.f32.mrf.mxu1 }
 0x1fa   : > { %4440 = vst [vmem:[#allocation8_spill] sm:$0xff] %v4170_v4  ;;  %v4173_v34 = vpop.f32.mrf.mxu0 }
 0x1fb   : > { %4441 = vst [vmem:[#allocation9_spill] sm:$0xff] %v4173_v34  ;;  %v4175_v20 = vadd.f32 %v2315_v38, %v1096_v61  ;;  %v2352_v14 = vpop.f32.mrf.mxu1 }
 0x1fc   : > { %v4177_v39 = vpop.f32.mrf.mxu0 }
 0x1fd   : > { %4442 = vst [vmem:[#allocation10_spill] sm:$0xff] %v4175_v20  ;;  %4443 = vst [vmem:[#allocation11_spill] sm:$0xff] %v4177_v39  ;;  %v2354_v22 = vpop.f32.mrf.mxu1 }
 0x1ff   : > { %v2431_v15 = vpop.f32.mrf.mxu0  ;;  %v2355_v23 = vpop.f32.mrf.mxu1 }
 0x201   : > { %v2432_v21 = vpop.f32.mrf.mxu0  ;;  %v2357_v7 = vpop.f32.mrf.mxu1 }
 0x203   : > { %v2434_v55 = vpop.f32.mrf.mxu0  ;;  %v2358_v46 = vpop.f32.mrf.mxu1 }
 0x205   : > { %v2435_v63 = vpop.f32.mrf.mxu0  ;;  %v2360_v8 = vpop.f32.mrf.mxu1 }
 0x207   : > { %v2437_v59 = vpop.f32.mrf.mxu0  ;;  %v2361_v17 = vpop.f32.mrf.mxu1 }
 0x209   : > { %v2438_v10 = vpop.f32.mrf.mxu0  ;;  %v4179_v13 = vpop.f32.mrf.mxu1 }
 0x20b   : > { %v2440_v33 = vpop.f32.mrf.mxu0  ;;  %v2364_v51 = vpop.f32.mrf.mxu1 }
 0x20d   : > { %v2441_v41 = vpop.f32.mrf.mxu0  ;;  %v2366_v3 = vpop.f32.mrf.mxu1 }
 0x20f   : > { %v4181_v5 = vpop.f32.mrf.mxu0  ;;  %v2367_v11 = vpop.f32.mrf.mxu1 }
 0x211   : > { %v2444_v24 = vpop.f32.mrf.mxu0  ;;  %v4183_v42 = vpop.f32.mrf.mxu1 }
 0x213   : > { %v2446_v45 = vpop.f32.mrf.mxu0  ;;  %v4185_v50 = vpop.f32.mrf.mxu1 }
 0x215   : > { %v2447_v12 = vpop.f32.mrf.mxu0  ;;  %v2372_v26 = vpop.f32.mrf.mxu1 }
 0x217   : > { %v4187_v35 = vpop.f32.mrf.mxu0  ;;  %v2373_v36 = vpop.f32.mrf.mxu1 }
 0x219   : > { %v4189_v56 = vpop.f32.mrf.mxu0  ;;  %v4191_v28 = vpop.f32.mrf.mxu1 }
 0x21b   : > { %v4193_v49 = vpop.f32.mrf.mxu0  ;;  %v4195_v18 = vpop.f32.mrf.mxu1 }
 0x21d   : > { %v2453_v32 = vpop.f32.mrf.mxu0  ;;  %v4197_v48 = vpop.f32.mrf.mxu1 }
 0x21f   : > { %v4199_v2 = vpop.f32.mrf.mxu0  ;;  %v4201_v16 = vpop.f32.mrf.mxu1 }
 0x221   : > { %v4203_v57 = vpop.f32.mrf.mxu0  ;;  %v4205_v1 = vpop.f32.mrf.mxu1 }
 0x222   : > { %4444 = vst [vmem:[#allocation12_spill] sm:$0xff] %v4205_v1  ;;  %v2436_v1 = vadd.f32 %v2435_v63, %v2434_v55  ;;  %v2365_v63 = vadd.f32 %v2364_v51, %v4179_v13  ;;  %v2454_v13 = vadd.f32 %v2453_v32, %v4193_v49 }
 0x223   : > { %v4207_v19 = vpop.f32.mrf.mxu0  ;;  %v4209_v53 = vpop.f32.mrf.mxu1 }
 0x224   : > { %4445 = vst [vmem:[#allocation13_spill] sm:$0xff] %v4209_v53 }
 0x225   : > { %v4211_v0 = vpop.f32.mrf.mxu0  ;;  %v4213_v25 = vpop.f32.mrf.mxu1 }
 0x227   : > { %v4215_v61 = vpop.f32.mrf.mxu0  ;;  %v4217_v38 = vpop.f32.mrf.mxu1 }
 0x228   : > { %4446 = vst [vmem:[#allocation14_spill] sm:$0xff] %v4215_v61  ;;  %4447 = vst [vmem:[#allocation15_spill] sm:$0xff] %v4217_v38  ;;  %v2356_v61 = vadd.f32 %v2355_v23, %v2354_v22  ;;  %v2442_v38 = vadd.f32 %v2441_v41, %v2440_v33  ;;  %v2439_v23 = vadd.f32 %v2438_v10, %v2437_v59 }
 0x229   : > { %v4219_v20 = vpop.f32.mrf.mxu0  ;;  %v4221_v47 = vpop.f32.mrf.mxu1  ;;  %v2451_v41 = vadd.f32 %v4189_v56, %v4187_v35  ;;  %v2460_v35 = vadd.f32 %v4211_v0, %v4207_v19  ;;  %v4460_v19 = vld [vmem:[#allocation12_spill] sm:$0xff] }
 0x22a   : > { %4448 = vst [vmem:[#allocation16_spill] sm:$0xff] %v4219_v20  ;;  %4449 = vst [vmem:[#allocation17_spill] sm:$0xff] %v4221_v47  ;;  %v2353_v20 = vadd.f32 %v2352_v14, %v2351_v43 }
 0x22b   : > { %v4223_v37 = vpop.f32.mrf.mxu0  ;;  %v4225_v4 = vpop.f32.mrf.mxu1  ;;  %v4461_v0 = vld [vmem:[#allocation13_spill] sm:$0xff] }
 0x22c   : > { %4450 = vst [vmem:[#allocation18_spill] sm:$0xff] %v4223_v37  ;;  %4451 = vst [vmem:[#allocation19_spill] sm:$0xff] %v4225_v4  ;;  %v2433_v37 = vadd.f32 %v2432_v21, %v2431_v15  ;;  %v1321_v4 = vadd.f32 %v2356_v61, %v4132_v54  ;;  %v2368_v15 = vadd.f32 %v2367_v11, %v2366_v3 }
 0x22d   : > { %v4227_v60 = vpop.f32.mrf.mxu1  ;;  %v4229_v39 = vpop.f32.mrf.mxu0 }
 0x22e   : > { %4452 = vst [vmem:[#allocation20_spill] sm:$0xff] %v4227_v60  ;;  %4453 = vst [vmem:[#allocation21_spill] sm:$0xff] %v4229_v39  ;;  %v2362_v60 = vadd.f32 %v2361_v17, %v2360_v8  ;;  %v2448_v17 = vadd.f32 %v2447_v12, %v2446_v45  ;;  %v2377_v12 = vadd.f32 %v4195_v18, %v4191_v28 }
 0x22f   : > { %v4231_v34 = vpop.f32.mrf.mxu1  ;;  %v4235_v29 = vpop.f32.mrf.mxu0 }
 0x230   : > { %4454 = vst [vmem:[#allocation22_spill] sm:$0xff] %v4231_v34  ;;  %4456 = vst [vmem:[#allocation24_spill] sm:$0xff] %v4235_v29  ;;  %v1316_v34 = vadd.f32 %v2353_v20, %v4129_v27  ;;  %v1466_v29 = vadd.f32 %v2436_v1, %v1321_v4  ;;  %v1331_v14 = vadd.f32 %v2362_v60, %v4138_v44 }
 0x231   : > { %v4233_v9 = vpop.f32.mrf.mxu1  ;;  %v4241_v6 = vpop.f32.mrf.mxu0  ;;  %v2445_v4 = vadd.f32 %v2444_v24, %v4181_v5  ;;  %v2374_v60 = vadd.f32 %v2373_v36, %v2372_v26 }
 0x232   : > { %4455 = vst [vmem:[#allocation23_spill] sm:$0xff] %v4233_v9  ;;  %v2359_v9 = vadd.f32 %v2358_v46, %v2357_v7  ;;  %v1461_v43 = vadd.f32 %v2433_v37, %v1316_v34  ;;  %v1476_v27 = vadd.f32 %v2442_v38, %v1331_v14  ;;  %v1341_v37 = vadd.f32 %v2368_v15, %v4144_v62  ;;  %v4459_v38 = vld [vmem:[#allocation4_spill] sm:$0xff] }
 0x233   : > { %v4237_v53 = vpop.f32.mrf.mxu1  ;;  %v1351_v11 = vadd.f32 %v2374_v60, %v4150_v58  ;;  %v2457_v58 = vadd.f32 %v4203_v57, %v4199_v2  ;;  %v4462_v14 = vld [vmem:[#allocation18_spill] sm:$0xff] }
 0x234   : > { %4457 = vst [vmem:[#allocation25_spill] sm:$0xff] %v4237_v53  ;;  %v4247_v53 = vpop.f32.mrf.mxu0  ;;  %v1326_v54 = vadd.f32 %v2359_v9, %v4135_v40  ;;  %v1336_v40 = vadd.f32 %v2365_v63, %v4141_v30  ;;  %v2371_v9 = vadd.f32 %v4185_v50, %v4183_v42  ;;  %v1486_v33 = vadd.f32 %v2448_v17, %v1341_v37  ;;  %v4466_v17 = vld [vmem:[#allocation5_spill] sm:$0xff] }
 0x235   : > { %v4239_v47 = vpop.f32.mrf.mxu1  ;;  %v2380_v30 = vadd.f32 %v4201_v16, %v4197_v48  ;;  %v1496_v36 = vadd.f32 %v2454_v13, %v1351_v11  ;;  %v4463_v2 = vld [vmem:[#allocation21_spill] sm:$0xff]  ;;  %v4474_v11 = vld [vmem:[#allocation3_spill] sm:$0xff] }
 0x236   : > { %v4253_v7 = vpop.f32.mrf.mxu0  ;;  %v1471_v59 = vadd.f32 %v2439_v23, %v1326_v54  ;;  %v1481_v5 = vadd.f32 %v2445_v4, %v1336_v40  ;;  %v1346_v50 = vadd.f32 %v2371_v9, %v4147_v52  ;;  %v4458_v52 = vld [vmem:[#allocation15_spill] sm:$0xff]  ;;  %v2383_v23 = vadd.f32 %v4461_v0, %v4460_v19  ;;  %v4472_v13 = vld [vmem:[#allocation9_spill] sm:$0xff] }
 0x237   : > { %v4244_v39 = vpop.f32.mrf.mxu1  ;;  %v1361_v16 = vadd.f32 %v2380_v30, %v4156_v31  ;;  %v2386_v1 = vadd.f32 %v4458_v52, %v4213_v25  ;;  %v2466_v57 = vadd.f32 %v4463_v2, %v4462_v14  ;;  %v4464_v31 = vld [vmem:[#allocation14_spill] sm:$0xff]  ;;  %v4471_v40 = vld [vmem:[#allocation19_spill] sm:$0xff]  ;;  %v4475_v30 = vld [vmem:[#allocation8_spill] sm:$0xff] }
 0x238   : > { %v4262_v62 = vpop.f32.mrf.mxu0  ;;  %v1491_v48 = vadd.f32 %v2451_v41, %v1346_v50  ;;  %v4468_v4 = vld [vmem:[#allocation22_spill] sm:$0xff]  ;;  %v2472_v41 = vadd.f32 %v4253_v7, %v4247_v53 }
 0x239   : > { %v2639_v22 = vpop.f32.mrf.mxu1  ;;  %v1506_v15 = vadd.f32 %v2460_v35, %v1361_v16  ;;  %v4477_v35 = vld [vmem:[#allocation7_spill] sm:$0xff]  ;;  %v4478_v7 = vld [vmem:[#allocation6_spill] sm:$0xff] }
 0x23a   : > { %v1611_v21 = vadd.f32 %v2639_v22, %v1466_v29  ;;  %v2474_v49 = vpop.f32.mrf.mxu0  ;;  %v1356_v22 = vadd.f32 %v2377_v12, %v4459_v38  ;;  %v4479_v16 = vld [vmem:[#allocation23_spill] sm:$0xff]  ;;  %v4481_v14 = vld [vmem:[#allocation10_spill] sm:$0xff] }
 0x23b   : > { %v1605_v55 = vpop.f32.mrf.mxu1  ;;  %v4480_v52 = vld [vmem:[#allocation25_spill] sm:$0xff] }
 0x23c   : > { %v1606_v8 = vadd.f32 %v1605_v55, %v1461_v43  ;;  %v1685_v44 = vmax.f32 %v1611_v21, 0.0  ;;  %v4465_v55 = vld [vmem:[#allocation16_spill] sm:$0xff]  ;;  %v2476_v25 = vpop.f32.mrf.mxu0 }
 0x23d   : > { %v2642_v20 = vpop.f32.mrf.mxu1  ;;  %v2463_v54 = vadd.f32 %v4465_v55, %v4464_v31 }
 0x23e   : > { %v1684_v46 = vmax.f32 %v1606_v8, 0.0  ;;  %v1621_v29 = vadd.f32 %v2642_v20, %v1476_v27  ;;  %v1501_v8 = vadd.f32 %v2457_v58, %v1356_v22  ;;  %v1371_v27 = vadd.f32 %v2386_v1, %v4466_v17  ;;  %v4467_v20 = vld [vmem:[#allocation20_spill] sm:$0xff]  ;;  %v2477_v50 = vpop.f32.mrf.mxu0  ;;  %v4312_v17 = vld [vmem:[%s4388_s6] ss:$0 sm:$0xff] }
 0x23f   : > { %v1615_v34 = vpop.f32.mrf.mxu1  ;;  %v2395_v1 = vadd.f32 %v4480_v52, %v4479_v16  ;;  %v2475_v22 = vadd.f32 %v2474_v49, %v4262_v62 }
 0x240   : > { %v1616_v10 = vadd.f32 %v1615_v34, %v1471_v59  ;;  %2693 = vmatprep.mubr.f32.mxu0 %v1684_v46  ;;  %v1687_v24 = vmax.f32 %v1621_v29, 0.0  ;;  %v2392_v46 = vadd.f32 %v4468_v4, %v4467_v20  ;;  %v4470_v34 = vld [vmem:[#allocation17_spill] sm:$0xff] }
 0x241   : > { %v2645_v51 = vpop.f32.mrf.mxu1  ;;  %2694 = vmatmul.mubr.f32.vlgmr.msra.gmra.mxu0 %v1685_v44  ;;  %v4469_v44 = vld [vmem:[#allocation2_spill] sm:$0xff]  ;;  %v2389_v9 = vadd.f32 %v4471_v40, %v4470_v34  ;;  %v1386_v2 = vadd.f32 %v2395_v1, %v4481_v14 }
 0x242   : > { %v1686_v3 = vmax.f32 %v1616_v10, 0.0  ;;  %v1631_v42 = vadd.f32 %v2645_v51, %v1486_v33  ;;  %v1366_v29 = vadd.f32 %v2383_v23, %v4469_v44  ;;  %v4473_v33 = vld [vmem:[#allocation11_spill] sm:$0xff] }
 0x243   : > { %v1625_v45 = vpop.f32.mrf.mxu1  ;;  %v2318_v51 = vadd.f32 %v4473_v33, %v4472_v13  ;;  %v1531_v55 = vadd.f32 %v2475_v22, %v1386_v2  ;;  %v2792_v13 = vld [vmem:[%s2949_s13 + $0x28] sm:$0xff]  ;;  %v2798_v22 = vld [vmem:[%s2949_s13 + $0x58] sm:$0xff] }
 0x244   : > { %v1626_v26 = vadd.f32 %v1625_v45, %v1481_v5  ;;  %2696 = vmatprep.mubr.f32.mxu0 %v1686_v3  ;;  %v1689_v28 = vmax.f32 %v1631_v42, 0.0  ;;  %v1516_v3 = vadd.f32 %v2466_v57, %v1371_v27  ;;  %v4476_v42 = vld [vmem:[#allocation24_spill] sm:$0xff] }
 0x245   : > { %v2648_v56 = vpop.f32.mrf.mxu1  ;;  %2697 = vmatmul.mubr.f32.gmra.mxu0 %v1687_v24  ;;  %v1101_v24 = vadd.f32 %v4475_v30, %v4474_v11  ;;  %v2469_v45 = vadd.f32 %v4241_v6, %v4476_v42  ;;  %v2478_v6 = vadd.f32 %v2477_v50, %v2476_v25 }
 0x246   : > { %v1688_v32 = vmax.f32 %v1626_v26, 0.0  ;;  %v1641_v18 = vadd.f32 %v2648_v56, %v1496_v36  ;;  %v1511_v26 = vadd.f32 %v2463_v54, %v1366_v29  ;;  %v1381_v36 = vadd.f32 %v2392_v46, %v4477_v35  ;;  %v2790_v46 = vld [vmem:[%s2949_s13 + $0x18] sm:$0xff]  ;;  %v2791_v29 = vld [vmem:[%s2949_s13 + $0x10] sm:$0xff] }
 0x247   : > { %v1635_v61 = vpop.f32.mrf.mxu1  ;;  %v2398_v56 = vadd.f32 %v4244_v39, %v4239_v47 }
 0x248   : > { %v1636_v43 = vadd.f32 %v1635_v61, %v1491_v48  ;;  %2699 = vmatprep.mubr.f32.mxu0 %v1688_v32  ;;  %v1691_v59 = vmax.f32 %v1641_v18, 0.0  ;;  %v1376_v48 = vadd.f32 %v2389_v9, %v4478_v7  ;;  %v1246_v18 = vadd.f32 %v2318_v51, %v1101_v24  ;;  %v2796_v7 = vld [vmem:[%s2949_s13 + $0x48] sm:$0xff] }
 0x249   : > { %v2651_v21 = vpop.f32.mrf.mxu1  ;;  %2700 = vmatmul.mubr.f32.gmra.mxu0 %v1689_v28  ;;  %v1526_v61 = vadd.f32 %v2472_v41, %v1381_v36  ;;  %v2795_v36 = vld [vmem:[%s2949_s13 + $0x30] sm:$0xff] }
 0x24a   : > { %v1690_v63 = vmax.f32 %v1636_v43, 0.0  ;;  %v1651_v37 = vadd.f32 %v2651_v21, %v1506_v15  ;;  %v1521_v0 = vadd.f32 %v2469_v45, %v1376_v48  ;;  %v1391_v47 = vadd.f32 %v2398_v56, %v1246_v18  ;;  %v2794_v45 = vld [vmem:[%s2949_s13 + $0x38] sm:$0xff] }
 0x24b   : > { %v1645_v60 = vpop.f32.mrf.mxu1 }
 0x24c   : > { %v1646_v10 = vadd.f32 %v1645_v60, %v1501_v8  ;;  %2702 = vmatprep.mubr.f32.mxu1 %v1690_v63  ;;  %v1693_v58 = vmax.f32 %v1651_v37, 0.0  ;;  %v1536_v15 = vadd.f32 %v2478_v6, %v1391_v47 }
 0x24d   : > { %v2654_v5 = vpop.f32.mrf.mxu1  ;;  %2703 = vmatmul.mubr.f32.vlgmr.msra.gmra.mxu1 %v1691_v59 }
 0x24e   : > { %v1692_v12 = vmax.f32 %v1646_v10, 0.0  ;;  %v1661_v32 = vadd.f32 %v2654_v5, %v1516_v3  ;;  %v2793_v5 = vld [vmem:[%s2949_s13 + $0x20] sm:$0xff] }
 0x24f   : > { %v1655_v53 = vpop.f32.mrf.mxu1 }
 0x250   : > { %v1656_v28 = vadd.f32 %v1655_v53, %v1511_v26  ;;  %2705 = vmatprep.mubr.f32.mxu1 %v1692_v12  ;;  %v1695_v39 = vmax.f32 %v1661_v32, 0.0 }
 0x251   : > { %v2657_v38 = vpop.f32.mrf.mxu1  ;;  %2706 = vmatmul.mubr.f32.gmra.mxu1 %v1693_v58 }
 0x252   : > { %v1694_v19 = vmax.f32 %v1656_v28, 0.0  ;;  %v1671_v23 = vadd.f32 %v2657_v38, %v1526_v61  ;;  %v2797_v28 = vld [vmem:[%s2949_s13 + $0x40] sm:$0xff] }
 0x253   : > { %v1665_v43 = vpop.f32.mrf.mxu1 }
 0x254   : > { %v1666_v57 = vadd.f32 %v1665_v43, %v1521_v0  ;;  %2708 = vmatprep.mubr.f32.mxu1 %v1694_v19  ;;  %v1697_v54 = vmax.f32 %v1671_v23, 0.0  ;;  %v2799_v23 = vld [vmem:[%s2949_s13 + $0x50] sm:$0xff] }
 0x255   : > { %v2660_v21 = vpop.f32.mrf.mxu1  ;;  %2709 = vmatmul.mubr.f32.gmra.mxu1 %v1695_v39 }
 0x256   : > { %v1696_v31 = vmax.f32 %v1666_v57, 0.0  ;;  %v1681_v62 = vadd.f32 %v2660_v21, %v1536_v15  ;;  %v2800_v15 = vld [vmem:[%s2949_s13 + $0x68] sm:$0xff] }
 0x257   : > { %v1675_v49 = vpop.f32.mrf.mxu1 }
 0x258   : > { %v1676_v25 = vadd.f32 %v1675_v49, %v1531_v55  ;;  %2711 = vmatprep.mubr.f32.mxu1 %v1696_v31  ;;  %v1699_v8 = vmax.f32 %v1681_v62, 0.0  ;;  %v2801_v62 = vld [vmem:[%s2949_s13 + $0x60] sm:$0xff] }
 0x259   : > { %2712 = vmatmul.mubr.f32.gmra.mxu1 %v1697_v54 }
 0x25a   : > { %v1698_v63 = vmax.f32 %v1676_v25, 0.0 }
 0x25c   : > { %2714 = vmatprep.mubr.f32.mxu1 %v1698_v63 }
 0x25d   : > { %2715 = vmatmul.mubr.f32.gmra.mxu1 %v1699_v8 }
 0x301   : > { %v2695_v27 = vpop.f32.mrf.mxu0 }
 0x302   : > { %v1795_v20 = vadd.f32 %v2695_v27, %v4312_v17  ;;  %v2802_v27 = vld [vmem:[%s2949_s13 + $0x78] sm:$0xff] }
 0x303   : > { %v1789_v4 = vpop.f32.mrf.mxu0 }
 0x304   : > { %v1869_v59 = vadd.f32 %v2790_v46, %v1795_v20  ;;  %v1790_v37 = vadd.f32 %v4312_v17, %v1789_v4 }
 0x305   : > { %v2698_v60 = vpop.f32.mrf.mxu0 }
 0x306   : > { %v1885_v44 = vmax.f32 %v1869_v59, 0.0  ;;  %v1868_v34 = vadd.f32 %v2791_v29, %v1790_v37  ;;  %v1805_v40 = vadd.f32 %v2698_v60, %v4312_v17  ;;  %v2803_v37 = vld [vmem:[%s2949_s13 + $0x70] sm:$0xff] }
 0x307   : > { %v1799_v9 = vpop.f32.mrf.mxu0 }
 0x308   : > { %1901 = vst [vmem:[%s4320_s25 + $0x8] sm:$0xff] %v1885_v44  ;;  %v1884_v10 = vmax.f32 %v1868_v34, 0.0  ;;  %v1871_v33 = vadd.f32 %v2792_v13, %v1805_v40  ;;  %v1800_v51 = vadd.f32 %v4312_v17, %v1799_v9  ;;  %v2804_v40 = vld [vmem:[%s2949_s13 + $0x88] sm:$0xff] }
 0x309   : > { %v2701_v41 = vpop.f32.mrf.mxu0 }
 0x30a   : > { %1900 = vst [vmem:[%s4320_s25] sm:$0xff] %v1884_v10  ;;  %v1887_v3 = vmax.f32 %v1871_v33, 0.0  ;;  %v1870_v11 = vadd.f32 %v2793_v5, %v1800_v51  ;;  %v1815_v30 = vadd.f32 %v2701_v41, %v4312_v17  ;;  %v2805_v33 = vld [vmem:[%s2949_s13 + $0x80] sm:$0xff] }
 0x30b   : > { %v1809_v24 = vpop.f32.mrf.mxu0 }
 0x30c   : > { %1903 = vst [vmem:[%s4320_s25 + $0x18] sm:$0xff] %v1887_v3  ;;  %v1886_v42 = vmax.f32 %v1870_v11, 0.0  ;;  %v1873_v50 = vadd.f32 %v2794_v45, %v1815_v30  ;;  %v1810_v12 = vadd.f32 %v4312_v17, %v1809_v24 }
 0x30d   : > { %v2704_v26 = vpop.f32.mrf.mxu1 }
 0x30e   : > { %1902 = vst [vmem:[%s4320_s25 + $0x10] sm:$0xff] %v1886_v42  ;;  %v1889_v35 = vmax.f32 %v1873_v50, 0.0  ;;  %v1872_v56 = vadd.f32 %v2795_v36, %v1810_v12  ;;  %v1825_v58 = vadd.f32 %v2704_v26, %v4312_v17 }
 0x30f   : > { %v1819_v32 = vpop.f32.mrf.mxu1 }
 0x310   : > { %1905 = vst [vmem:[%s4320_s25 + $0x28] sm:$0xff] %v1889_v35  ;;  %v1888_v53 = vmax.f32 %v1872_v56, 0.0  ;;  %v1875_v48 = vadd.f32 %v2796_v7, %v1825_v58  ;;  %v1820_v16 = vadd.f32 %v4312_v17, %v1819_v32 }
 0x311   : > { %v2707_v52 = vpop.f32.mrf.mxu1 }
 0x312   : > { %1904 = vst [vmem:[%s4320_s25 + $0x20] sm:$0xff] %v1888_v53  ;;  %v1891_v1 = vmax.f32 %v1875_v48, 0.0  ;;  %v1874_v18 = vadd.f32 %v2797_v28, %v1820_v16  ;;  %v1835_v6 = vadd.f32 %v2707_v52, %v4312_v17 }
 0x313   : > { %v1829_v61 = vpop.f32.mrf.mxu1 }
 0x314   : > { %1907 = vst [vmem:[%s4320_s25 + $0x38] sm:$0xff] %v1891_v1  ;;  %v1890_v38 = vmax.f32 %v1874_v18, 0.0  ;;  %v1877_v19 = vadd.f32 %v2798_v22, %v1835_v6  ;;  %v1830_v0 = vadd.f32 %v4312_v17, %v1829_v61 }
 0x315   : > { %v2710_v47 = vpop.f32.mrf.mxu1 }
 0x316   : > { %1906 = vst [vmem:[%s4320_s25 + $0x30] sm:$0xff] %v1890_v38  ;;  %v1893_v39 = vmax.f32 %v1877_v19, 0.0  ;;  %v1876_v43 = vadd.f32 %v2799_v23, %v1830_v0  ;;  %v1845_v14 = vadd.f32 %v2710_v47, %v4312_v17 }
 0x317   : > { %v1839_v2 = vpop.f32.mrf.mxu1 }
 0x318   : > { %1909 = vst [vmem:[%s4320_s25 + $0x48] sm:$0xff] %v1893_v39  ;;  %v1892_v57 = vmax.f32 %v1876_v43, 0.0  ;;  %v1879_v21 = vadd.f32 %v2800_v15, %v1845_v14  ;;  %v1840_v31 = vadd.f32 %v4312_v17, %v1839_v2 }
 0x319   : > { %v2713_v55 = vpop.f32.mrf.mxu1 }
 0x31a   : > { %1908 = vst [vmem:[%s4320_s25 + $0x40] sm:$0xff] %v1892_v57  ;;  %v1895_v54 = vmax.f32 %v1879_v21, 0.0  ;;  %v1878_v49 = vadd.f32 %v2801_v62, %v1840_v31  ;;  %v1855_v25 = vadd.f32 %v2713_v55, %v4312_v17 }
 0x31b   : > { %v1849_v63 = vpop.f32.mrf.mxu1 }
 0x31c   : > { %1911 = vst [vmem:[%s4320_s25 + $0x58] sm:$0xff] %v1895_v54  ;;  %v1894_v8 = vmax.f32 %v1878_v49, 0.0  ;;  %v1881_v20 = vadd.f32 %v2802_v27, %v1855_v25  ;;  %v1850_v4 = vadd.f32 %v4312_v17, %v1849_v63 }
 0x31d   : > { %v2716_v46 = vpop.f32.mrf.mxu1 }
 0x31e   : > { %1910 = vst [vmem:[%s4320_s25 + $0x50] sm:$0xff] %v1894_v8  ;;  %v1897_v59 = vmax.f32 %v1881_v20, 0.0  ;;  %v1880_v60 = vadd.f32 %v2803_v37, %v1850_v4  ;;  %v1865_v44 = vadd.f32 %v2716_v46, %v4312_v17 }
 0x31f   : > { %v1859_v29 = vpop.f32.mrf.mxu1 }
 0x320   : > { %1913 = vst [vmem:[%s4320_s25 + $0x68] sm:$0xff] %v1897_v59  ;;  %v1896_v34 = vmax.f32 %v1880_v60, 0.0  ;;  %v1883_v9 = vadd.f32 %v2804_v40, %v1865_v44  ;;  %v1860_v10 = vadd.f32 %v4312_v17, %v1859_v29 }
 0x322   : > { %1912 = vst [vmem:[%s4320_s25 + $0x60] sm:$0xff] %v1896_v34  ;;  %v1899_v13 = vmax.f32 %v1883_v9, 0.0  ;;  %v1882_v51 = vadd.f32 %v2805_v33, %v1860_v10 }
 0x324   : > { %1915 = vst [vmem:[%s4320_s25 + $0x78] sm:$0xff] %v1899_v13  ;;  %v1898_v41 = vmax.f32 %v1882_v51, 0.0 }
 0x326   : > { %1914 = vst [vmem:[%s4320_s25 + $0x70] sm:$0xff] %v1898_v41 }
 0x327 PF: > { %s17_s28 = sadd.s32 1, %s2844_s28   ;;  %s4482_s24 = smov %s2836_s26 }
 0x328   : > { %p14_p7 = scmp.ge.s32.totalorder %s17_s28, 6   ;;  %s4483_s25 = smov %s2840_s27 }
 0x329   : > { %s4484_s26 = smov %s4487_s29  ;;  %s4485_s27 = smov %s4491_s30 }
 0x32a   :  { %16 = sbr.rel (!%p14_p7) target bundleno = 3 (0x3), region = 79 }

</bundles_post_ra>
